<compile_context>
chip_gen: v7x
topology: tpu7x:2x2x1
jax: 0.10.0
libtpu: 0.0.40
codegen_flags: <defaults>
</compile_context>

<pallas_src>
import jax
import jax.numpy as jnp
from jax.experimental import pallas as pl
from jax.experimental.pallas import tpu as pltpu

C_IN = 256
C_OUT = 1024
NEG_SLOPE = 0.2
BN_EPS = 1e-5
_DEFAULT_TILE_N = 1024  # multiple of 128; ~10 MiB VMEM footprint -> safe on all gens


def _make_kernel(n_points: int, tile_n: int, n_tiles: int, needs_mask: bool):
    multi = n_tiles > 1
    if multi:
        assert tile_n % 128 == 0
    n_sub = tile_n // 128 if multi else 0

    def kernel(x_ref, w_ref, b_ref, o_ref, acc_ref):
        # x_ref:   (1, C_IN, tile_n)  native NCW slice of the input
        # w_ref:   (C_OUT, C_IN)      bf16 conv weight with BN scale folded in
        # b_ref:   (C_OUT, 1)         f32 folded BN bias (applied post-max)
        # o_ref:   (1, C_OUT, 1)      final per-channel result
        # acc_ref: (C_OUT, 128)       lane-dense running-max scratch (multi-tile)
        t = pl.program_id(1)

        x = x_ref[0]
        if x.dtype != jnp.bfloat16:
            x = x.astype(jnp.bfloat16)                          # (C_IN, tile_n)

        # Raw conv: (C_OUT, C_IN) @ (C_IN, tile_n) on the MXU, f32 accumulation.
        y = jnp.dot(w_ref[...], x,
                    preferred_element_type=jnp.float32)         # (C_OUT, tile_n)

        def epilogue(chan_max):
            # max∘LeakyReLU∘(+bias) == LeakyReLU∘(+bias)∘max (both monotone).
            z = chan_max + b_ref[...]                           # (C_OUT, 1)
            o_ref[0] = jnp.maximum(z, NEG_SLOPE * z).astype(o_ref.dtype)

        if not multi:
            # Single tile covers all N points (tile_n == N): direct reduce.
            epilogue(jnp.max(y, axis=1, keepdims=True))
            return

        def fold(mask_tail):
            # Fold (C_OUT, tile_n) -> (C_OUT, 128) with pure-VPU maxima over
            # aligned 128-lane chunks; mask invalid tail columns to -inf on
            # the RAW matmul output (required for correctness).
            col = (jax.lax.broadcasted_iota(jnp.int32, (1, 128), 1)
                   if mask_tail else None)

            def chunk(j):
                c = y[:, j * 128:(j + 1) * 128]
                if mask_tail:
                    valid = (t * tile_n + j * 128 + col) < n_points
                    c = jnp.where(valid, c, -jnp.inf)
                return c

            f = chunk(0)
            for j in range(1, n_sub):
                f = jnp.maximum(f, chunk(j))
            return f

        def accumulate(upd):
            @pl.when(t == 0)
            def _():
                acc_ref[...] = upd                              # init merged w/ 1st update

            @pl.when(t > 0)
            def _():
                acc_ref[...] = jnp.maximum(acc_ref[...], upd)

        last = n_tiles - 1
        if needs_mask:
            # Tail mask only ever runs on the last N-tile.
            @pl.when(t == last)
            def _():
                accumulate(fold(True))

            @pl.when(t < last)
            def _():
                accumulate(fold(False))
        else:
            accumulate(fold(False))

        @pl.when(t == last)
        def _():
            # One cross-lane reduce + bias + LeakyReLU per batch row.
            epilogue(jnp.max(acc_ref[...], axis=1, keepdims=True))

    return kernel


def _fold_bn(conv_w, gamma, beta, run_mean, run_var):
    """Fold eval-mode BatchNorm into (bf16 scaled weight, f32 bias).

    Contract: this kernel implements inference-time (running-stats) BatchNorm.
    TODO(synk): train-mode batch statistics / Dropout are not modeled.
    """
    scale = gamma / jnp.sqrt(run_var + BN_EPS)                  # (C_OUT,)
    bias = (beta - run_mean * scale).astype(jnp.float32)        # (C_OUT,)
    w = conv_w[:, :, 0].astype(jnp.float32)                     # (C_OUT, C_IN)
    w_scaled = (w * scale[:, None]).astype(jnp.bfloat16)        # scale folded in
    return w_scaled, bias


def encoder_tail(x_ncw, conv_w, gamma, beta, run_mean, run_var, *, tile_n=None):
    """x_ncw: (B, 256, N) float32/bf16  ->  (B, 1024, 1) float32 (eval-mode BN)."""
    B, c_in, N = x_ncw.shape
    assert c_in == C_IN

    w_bf16, bias = _fold_bn(conv_w, gamma, beta, run_mean, run_var)
    bias_col = bias.reshape(C_OUT, 1)

    if tile_n is None:
        tile_n = _DEFAULT_TILE_N
    tile_n = min(tile_n, N)                     # single tile if it covers all points
    if tile_n < N and tile_n % 128 != 0:
        raise ValueError("tile_n must be a multiple of 128 when tiling N")
    n_tiles = pl.cdiv(N, tile_n)
    needs_mask = (n_tiles * tile_n) != N

    kernel = _make_kernel(N, tile_n, n_tiles, needs_mask)

    cost = pl.CostEstimate(
        flops=2 * B * C_OUT * C_IN * N,
        transcendentals=0,
        bytes_accessed=(x_ncw.size * x_ncw.dtype.itemsize
                        + w_bf16.size * 2 + bias_col.size * 4 + B * C_OUT * 4),
    )

    out = pl.pallas_call(
        kernel,
        out_shape=jax.ShapeDtypeStruct((B, C_OUT, 1), jnp.float32),
        grid_spec=pltpu.PrefetchScalarGridSpec(
            num_scalar_prefetch=0,
            grid=(B, n_tiles),
            in_specs=[
                pl.BlockSpec((1, C_IN, tile_n), lambda b, t: (b, 0, t)),
                pl.BlockSpec((C_OUT, C_IN), lambda b, t: (0, 0)),
                pl.BlockSpec((C_OUT, 1), lambda b, t: (0, 0)),
            ],
            out_specs=pl.BlockSpec((1, C_OUT, 1), lambda b, t: (b, 0, 0)),
            scratch_shapes=[pltpu.VMEM((C_OUT, 128), jnp.float32)],
        ),
        compiler_params=pltpu.CompilerParams(
            dimension_semantics=("parallel", "arbitrary"),
            vmem_limit_bytes=32 << 20),
        cost_estimate=cost,
    )(x_ncw, w_bf16, bias_col)

    return out  # (B, C_OUT, 1) — matches the PyTorch output layout


def _reference_f32(x, conv_w, gamma, beta, run_mean, run_var):
    """Full-f32 eager reference of the original op (PyTorch order)."""
    y = jnp.einsum("bcn,oc->bon", x, conv_w[:, :, 0])
    scale = gamma / jnp.sqrt(run_var + BN_EPS)
    bias = beta - run_mean * scale
    y = y * scale[None, :, None] + bias[None, :, None]
    y = jnp.where(y >= 0.0, y, NEG_SLOPE * y)
    return jnp.max(y, axis=2, keepdims=True)                    # (B, C_OUT, 1)


def _reference_matched(x, w_bf16, bias):
    """Same math / precision as the kernel (bf16 matmul, f32 accumulate)."""
    xb = x.astype(jnp.bfloat16)
    y = jnp.einsum("oc,bcn->bon", w_bf16, xb,
                   preferred_element_type=jnp.float32)
    y = y + bias[None, :, None]
    y = jnp.where(y >= 0.0, y, NEG_SLOPE * y)
    return jnp.max(y, axis=2, keepdims=True)                    # (B, C_OUT, 1)


def _check(out, x, conv_w, gamma, beta, run_mean, run_var, w_bf16, bias):
    ref_m = _reference_matched(x, w_bf16, bias)
    ref_f = _reference_f32(x, conv_w, gamma, beta, run_mean, run_var)
    assert out.shape == ref_m.shape, (out.shape, ref_m.shape)
    assert jnp.allclose(out, ref_m, atol=5e-3, rtol=5e-3), \
        float(jnp.max(jnp.abs(out - ref_m)))
    assert jnp.allclose(out, ref_f, atol=5e-2, rtol=5e-2), \
        float(jnp.max(jnp.abs(out - ref_f)))


if __name__ == "__main__":
    key = jax.random.PRNGKey(0)
    k_x, k_x2, k_x3, k_w, k_g, k_b, k_m, k_v = jax.random.split(key, 8)

    B = 2
    # Deterministic synthetic parameters (shapes match nn.Conv1d / nn.BatchNorm1d).
    conv_w = jax.random.normal(k_w, (C_OUT, C_IN, 1), dtype=jnp.float32) * 0.05
    gamma = 1.0 + 0.1 * jax.random.normal(k_g, (C_OUT,), dtype=jnp.float32)
    beta = 0.1 * jax.random.normal(k_b, (C_OUT,), dtype=jnp.float32)
    run_mean = 0.1 * jax.random.normal(k_m, (C_OUT,), dtype=jnp.float32)
    run_var = jnp.abs(jax.random.normal(k_v, (C_OUT,), dtype=jnp.float32)) + 0.5

    w_bf16, bias = _fold_bn(conv_w, gamma, beta, run_mean, run_var)

    # Case 1: small N, single N-tile (tile_n == N), direct reduce path.
    x1 = jax.random.normal(k_x, (B, C_IN, 16), dtype=jnp.float32)
    out1 = jax.block_until_ready(
        encoder_tail(x1, conv_w, gamma, beta, run_mean, run_var))
    assert out1.shape == (B, C_OUT, 1), out1.shape
    _check(out1, x1, conv_w, gamma, beta, run_mean, run_var, w_bf16, bias)

    # Case 2: multi-tile N reduction, exact tiling (no tail mask), scratch path.
    x2 = jax.random.normal(k_x2, (B, C_IN, 256), dtype=jnp.float32)
    out2 = jax.block_until_ready(
        encoder_tail(x2, conv_w, gamma, beta, run_mean, run_var, tile_n=128))
    assert out2.shape == (B, C_OUT, 1), out2.shape
    _check(out2, x2, conv_w, gamma, beta, run_mean, run_var, w_bf16, bias)

    # Case 3: multi-tile N reduction with a masked (out-of-bounds) tail tile.
    x3 = jax.random.normal(k_x3, (B, C_IN, 200), dtype=jnp.float32)
    out3 = jax.block_until_ready(
        encoder_tail(x3, conv_w, gamma, beta, run_mean, run_var, tile_n=128))
    assert out3.shape == (B, C_OUT, 1), out3.shape
    _check(out3, x3, conv_w, gamma, beta, run_mean, run_var, w_bf16, bias)

    print("KERNEL_OK")
</pallas_src>

<mosaic_0001>
module attributes {stable_mosaic.version = 11 : i64} {
  func.func @kernel(%arg0: i32, %arg1: i32, %arg2: memref<1x256x16xf32, #tpu.memory_space<vmem>>, %arg3: memref<1024x256xbf16, #tpu.memory_space<vmem>>, %arg4: memref<1024x1xf32, #tpu.memory_space<vmem>>, %arg5: memref<1x1024x1xf32, #tpu.memory_space<vmem>>, %arg6: memref<1024x128xf32, #tpu.memory_space<vmem>>) attributes {dimension_semantics = [#tpu.dimension_semantics<parallel>, #tpu.dimension_semantics<arbitrary>], iteration_bounds = array<i64: 2, 1>, scalar_prefetch = 0 : i64, scratch_operands = 1 : i64, tpu.core_type = #tpu.core_type<tc>, window_params = [{transform_indices = @transform_0, window_bounds = array<i64: 1, 256, 16>}, {pipeline_mode = #tpu.pipeline_mode<synchronous>, transform_indices = @transform_1, window_bounds = array<i64: 1024, 256>}, {pipeline_mode = #tpu.pipeline_mode<synchronous>, transform_indices = @transform_2, window_bounds = array<i64: 1024, 1>}, {transform_indices = @transform_3, window_bounds = array<i64: 1, 1024, 1>}]} {
    %c0 = arith.constant 0 : index
    %c0_0 = arith.constant 0 : index
    %c0_1 = arith.constant 0 : index
    %0 = vector.load %arg2[%c0, %c0_0, %c0_1] : memref<1x256x16xf32, #tpu.memory_space<vmem>>, vector<1x256x16xf32>
    %1 = vector.shape_cast %0 : vector<1x256x16xf32> to vector<256x16xf32>
    %2 = arith.truncf %1 : vector<256x16xf32> to vector<256x16xbf16>
    %c0_2 = arith.constant 0 : index
    %c0_3 = arith.constant 0 : index
    %3 = vector.load %arg3[%c0_2, %c0_3] : memref<1024x256xbf16, #tpu.memory_space<vmem>>, vector<1024x256xbf16>
    %cst = arith.constant dense<0.000000e+00> : vector<1024x16xf32>
    %4 = tpu.matmul %3, %2, %cst {dimension_numbers = #tpu.dot_dimension_numbers<[1], [0], [0], [1], [0, 0, 1, 1], [], []>} : vector<1024x256xbf16>, vector<256x16xbf16>, vector<1024x16xf32> -> vector<1024x16xf32>
    %cst_4 = arith.constant dense<0xFF800000> : vector<1024xf32>
    %5 = vector.multi_reduction <maximumf>, %4, %cst_4 [1] : vector<1024x16xf32> to vector<1024xf32>
    %6 = vector.shape_cast %5 : vector<1024xf32> to vector<1024x1xf32>
    %c0_5 = arith.constant 0 : index
    %c0_6 = arith.constant 0 : index
    %7 = vector.load %arg4[%c0_5, %c0_6] : memref<1024x1xf32, #tpu.memory_space<vmem>>, vector<1024x1xf32>
    %8 = arith.addf %6, %7 : vector<1024x1xf32>
    %cst_7 = arith.constant 2.000000e-01 : f32
    %9 = vector.broadcast %cst_7 : f32 to vector<1024x1xf32>
    %10 = arith.mulf %9, %8 : vector<1024x1xf32>
    %11 = arith.maximumf %8, %10 : vector<1024x1xf32>
    %c0_8 = arith.constant 0 : index
    %c0_9 = arith.constant 0 : index
    %c0_10 = arith.constant 0 : index
    %12 = vector.load %arg5[%c0_8, %c0_9, %c0_10] : memref<1x1024x1xf32, #tpu.memory_space<vmem>>, vector<1x1024x1xf32>
    %13 = vector.shape_cast %12 : vector<1x1024x1xf32> to vector<1024x1xf32>
    %14 = vector.shape_cast %11 : vector<1024x1xf32> to vector<1x1024x1xf32>
    tpu.vector_store %arg5[%c0_8, %c0_9, %c0_10], %14 {strides = array<i32>} : memref<1x1024x1xf32, #tpu.memory_space<vmem>>, vector<1x1024x1xf32>,
    return
  }
  func.func @transform_0(%arg0: i32, %arg1: i32) -> (i32, i32, i32) {
    %c0_i32 = arith.constant 0 : i32
    %c0_i32_0 = arith.constant 0 : i32
    return %arg0, %c0_i32, %arg1 : i32, i32, i32
  }
  func.func @transform_1(%arg0: i32, %arg1: i32) -> (i32, i32) {
    %c0_i32 = arith.constant 0 : i32
    %c0_i32_0 = arith.constant 0 : i32
    %c0_i32_1 = arith.constant 0 : i32
    return %c0_i32, %c0_i32_0 : i32, i32
  }
  func.func @transform_2(%arg0: i32, %arg1: i32) -> (i32, i32) {
    %c0_i32 = arith.constant 0 : i32
    %c0_i32_0 = arith.constant 0 : i32
    %c0_i32_1 = arith.constant 0 : i32
    return %c0_i32, %c0_i32_0 : i32, i32
  }
  func.func @transform_3(%arg0: i32, %arg1: i32) -> (i32, i32, i32) {
    %c0_i32 = arith.constant 0 : i32
    %c0_i32_0 = arith.constant 0 : i32
    %c0_i32_1 = arith.constant 0 : i32
    return %arg0, %c0_i32, %c0_i32_0 : i32, i32, i32
  }
}

</mosaic_0001>

<bundles_post_ra>
// kernel: tpu_custom_call.1
= control target key start
LH: loop header
LB: loop body
LE: loop exit
PB: predicated region body
PF: predicated region fallthrough
CT: control target
= control target key end

     0   :  { %s3086_s12 = smov 0   ;;  %s3088_s13 = smov 0   ;;  %s4343_s0 = inlined_call_operand.vmem [shape: f32[2,256,16], index: 0, kind: input, shape index: {}]   ;;  %s4344_s1 = inlined_call_operand.vmem [shape: bf16[1024,256], index: 1, kind: input, shape index: {}]   ;;  %s4345_s2 = inlined_call_operand.vmem [shape: f32[1024,1], index: 2, kind: input, shape index: {}]   ;;  %s4346_s3 = inlined_call_operand.vmem [shape: f32[2,1024,1], index: 3, kind: output, shape index: {}]  }
   0x1   :  { %s3090_s14 = smov 0  }
   0x2 LB: > { %s25_s15 = sadd.s32 1, %s3059_s13  ;;  %p2655_p0 = scmp.ge.s32.totalorder %s3063_s14, 1  ;;  %s3063_s14 = sphi %s3090_s14, %s13_s14   ;;  %s3059_s13 = sphi %s3088_s13, %s4348_s13   ;;  %s3055_s12 = sphi %s3086_s12, %s4347_s12  }
   0x3   : > { %p27_p1 = scmp.ge.s32.totalorder %s25_s15, 2  ;;  %p154_p2 = scmp.lt.s32.totalorder %s3063_s14, 3 }
   0x5   : > { %s4350_s15 = smov (%p27_p1, %s25_s15), 0  ;;  %p155_p3 = pnand %p2655_p0, %p154_p2 }
   0x6   : > { %p181_p4 = scmp.lt.s32.totalorder (!%p155_p3), %s3055_s12, 1  ;;  %v3065_v0 = vmov (!%p155_p3), 0   ;;  %v2851_v1 = vld [vmem:[%s4344_s1 + $0x4] ss:$8 sps:$4 sm:$0xff] (!%p155_p3)   ;;  %v2849_v51 = vld [vmem:[%s4344_s1] ss:$8 sps:$4 sm:$0xff] (!%p155_p3)  }
   0x7   : > { %158 = sbr.rel (%p155_p3) target bundleno = 702 (0x2be), region = 32  ;;  %1011 = vmatprep.subr.bf16.mxu0 (!%p155_p3), %v3065_v0  ;;  %2792 = vmatprep.subr.bf16.mxu1 (!%p155_p3), %v3065_v0  ;;  %v2854_v2 = vld [vmem:[%s4344_s1 + $0x204] ss:$8 sps:$4 sm:$0xff] (!%p155_p3)   ;;  %v2852_v52 = vld [vmem:[%s4344_s1 + $0x200] ss:$8 sps:$4 sm:$0xff] (!%p155_p3)   ;;  %vm1556_vm0 = vcmask (!%p155_p3), 130048  }
   0x8   : > { %1043 = vmatprep.mubr.bf16.mxu0 (!%p155_p3), %v2851_v1  ;;  %1299 = vmatprep.mubr.bf16.mxu1 (!%p155_p3), %v2854_v2  ;;  %v2855_v53 = vld [vmem:[%s4344_s1 + $0x14] ss:$8 sps:$4 sm:$0xff] (!%p155_p3)   ;;  %v2857_v55 = vld [vmem:[%s4344_s1 + $0x10] ss:$8 sps:$4 sm:$0xff] (!%p155_p3)   ;;  %v2861_v57 = vld [vmem:[%s4344_s1 + $0x24] ss:$8 sps:$4 sm:$0xff] (!%p155_p3)  }
   0x9   : > { %v2858_v54 = vld [vmem:[%s4344_s1 + $0x214] ss:$8 sps:$4 sm:$0xff] (!%p155_p3)   ;;  %v2860_v56 = vld [vmem:[%s4344_s1 + $0x210] ss:$8 sps:$4 sm:$0xff] (!%p155_p3)   ;;  %v2864_v58 = vld [vmem:[%s4344_s1 + $0x224] ss:$8 sps:$4 sm:$0xff] (!%p155_p3)  }
   0xa   : > { %v2863_v59 = vld [vmem:[%s4344_s1 + $0x20] ss:$8 sps:$4 sm:$0xff] (!%p155_p3)   ;;  %v2867_v61 = vld [vmem:[%s4344_s1 + $0x34] ss:$8 sps:$4 sm:$0xff] (!%p155_p3)   ;;  %v2869_v63 = vld [vmem:[%s4344_s1 + $0x30] ss:$8 sps:$4 sm:$0xff] (!%p155_p3)  }
   0xb   : > { %v2866_v60 = vld [vmem:[%s4344_s1 + $0x220] ss:$8 sps:$4 sm:$0xff] (!%p155_p3)   ;;  %v2870_v62 = vld [vmem:[%s4344_s1 + $0x234] ss:$8 sps:$4 sm:$0xff] (!%p155_p3)   ;;  %v2873_v1 = vld [vmem:[%s4344_s1 + $0x44] ss:$8 sps:$4 sm:$0xff] (!%p155_p3)  }
   0xc   : > { %v2876_v2 = vld [vmem:[%s4344_s1 + $0x244] ss:$8 sps:$4 sm:$0xff] (!%p155_p3)   ;;  %vm2453_vm1 = vcmask (!%p155_p3), 7168  }
   0xe   : > { %s4352_s12 = smov (!%p181_p4, %s3055_s12), 1 }
   0xf   : > { %s2790_s20 = sshll.u32 %s4352_s12, 8  ;;  %s2791_s27 = sshll.u32 %s4352_s12, 10 }
  0x10   : > { %s3118_s23 = scalar_lea.vmem %s4343_s0, %s2790_s20  ;;  %s3646_s4 = scalar_lea.vmem %s4346_s3, %s2791_s27 }
  0x11   : > { %v195_v3 = vld [vmem:[%s3118_s23] sm:$0xff]  ;;  %v196_v4 = vld [vmem:[%s3118_s23 + $0x8] sm:$0xff]  ;;  %v197_v5 = vld [vmem:[%s3118_s23 + $0x10] sm:$0xff] }
  0x12   : > { %v227_v6 = vpack.c.bf16 %v196_v4, %v195_v3  ;;  %v198_v7 = vld [vmem:[%s3118_s23 + $0x18] sm:$0xff]  ;;  %v199_v9 = vld [vmem:[%s3118_s23 + $0x20] sm:$0xff]  ;;  %v200_v10 = vld [vmem:[%s3118_s23 + $0x28] sm:$0xff] }
  0x13   : > { %v228_v8 = vpack.c.bf16 %v198_v7, %v197_v5  ;;  %v229_v11 = vpack.c.bf16 %v200_v10, %v199_v9  ;;  %v201_v12 = vld [vmem:[%s3118_s23 + $0x30] sm:$0xff]  ;;  %v202_v13 = vld [vmem:[%s3118_s23 + $0x38] sm:$0xff]  ;;  %v203_v15 = vld [vmem:[%s3118_s23 + $0x40] sm:$0xff] }
  0x14   : > { %1012 = vmatpush1.bf16.msra.mxu0 %v227_v6  ;;  %2808 = vmatpush1.bf16.msra.mxu1 %v227_v6  ;;  %v230_v14 = vpack.c.bf16 %v202_v13, %v201_v12  ;;  %v204_v16 = vld [vmem:[%s3118_s23 + $0x48] sm:$0xff]  ;;  %v205_v18 = vld [vmem:[%s3118_s23 + $0x50] sm:$0xff]  ;;  %v206_v19 = vld [vmem:[%s3118_s23 + $0x58] sm:$0xff] }
  0x15   : > { %1013 = vmatprep.subr.bf16.mxu0 %v3065_v0  ;;  %2793 = vmatprep.subr.bf16.mxu1 %v3065_v0  ;;  %v231_v17 = vpack.c.bf16 %v204_v16, %v203_v15  ;;  %v232_v20 = vpack.c.bf16 %v206_v19, %v205_v18  ;;  %v207_v21 = vld [vmem:[%s3118_s23 + $0x60] sm:$0xff]  ;;  %v208_v22 = vld [vmem:[%s3118_s23 + $0x68] sm:$0xff]  ;;  %v209_v24 = vld [vmem:[%s3118_s23 + $0x70] sm:$0xff] }
  0x16   : > { %v233_v23 = vpack.c.bf16 %v208_v22, %v207_v21  ;;  %v210_v25 = vld [vmem:[%s3118_s23 + $0x78] sm:$0xff]  ;;  %v211_v27 = vld [vmem:[%s3118_s23 + $0x80] sm:$0xff]  ;;  %v212_v28 = vld [vmem:[%s3118_s23 + $0x88] sm:$0xff] }
  0x17   : > { %v234_v26 = vpack.c.bf16 %v210_v25, %v209_v24  ;;  %v235_v29 = vpack.c.bf16 %v212_v28, %v211_v27  ;;  %v213_v30 = vld [vmem:[%s3118_s23 + $0x90] sm:$0xff]  ;;  %v214_v31 = vld [vmem:[%s3118_s23 + $0x98] sm:$0xff]  ;;  %v215_v33 = vld [vmem:[%s3118_s23 + $0xa0] sm:$0xff] }
  0x18   : > { %1014 = vmatpush1.bf16.msra.mxu0 %v228_v8  ;;  %2809 = vmatpush1.bf16.msra.mxu1 %v228_v8  ;;  %v236_v32 = vpack.c.bf16 %v214_v31, %v213_v30  ;;  %v216_v34 = vld [vmem:[%s3118_s23 + $0xa8] sm:$0xff]  ;;  %v217_v36 = vld [vmem:[%s3118_s23 + $0xb0] sm:$0xff]  ;;  %v218_v37 = vld [vmem:[%s3118_s23 + $0xb8] sm:$0xff] }
  0x19   : > { %1015 = vmatprep.subr.bf16.mxu0 %v3065_v0  ;;  %2794 = vmatprep.subr.bf16.mxu1 %v3065_v0  ;;  %v237_v35 = vpack.c.bf16 %v216_v34, %v215_v33  ;;  %v219_v38 = vld [vmem:[%s3118_s23 + $0xc0] sm:$0xff]  ;;  %v238_v39 = vpack.c.bf16 %v218_v37, %v217_v36  ;;  %v220_v40 = vld [vmem:[%s3118_s23 + $0xc8] sm:$0xff]  ;;  %v221_v41 = vld [vmem:[%s3118_s23 + $0xd0] sm:$0xff] }
  0x1a   : > { %v222_v42 = vld [vmem:[%s3118_s23 + $0xd8] sm:$0xff]  ;;  %v239_v43 = vpack.c.bf16 %v220_v40, %v219_v38  ;;  %v223_v44 = vld [vmem:[%s3118_s23 + $0xe0] sm:$0xff]  ;;  %v224_v46 = vld [vmem:[%s3118_s23 + $0xe8] sm:$0xff] }
  0x1b   : > { %v240_v45 = vpack.c.bf16 %v222_v42, %v221_v41  ;;  %v225_v47 = vld [vmem:[%s3118_s23 + $0xf0] sm:$0xff]  ;;  %v226_v48 = vld [vmem:[%s3118_s23 + $0xf8] sm:$0xff]  ;;  %v241_v49 = vpack.c.bf16 %v224_v46, %v223_v44  ;;  %v2875_v3 = vld [vmem:[%s4344_s1 + $0x40] ss:$8 sps:$4 sm:$0xff]  }
  0x1c   : > { %1016 = vmatpush1.bf16.msra.mxu0 %v229_v11  ;;  %2810 = vmatpush1.bf16.msra.mxu1 %v229_v11  ;;  %v242_v50 = vpack.c.bf16 %v226_v48, %v225_v47  ;;  %v2878_v4 = vld [vmem:[%s4344_s1 + $0x240] ss:$8 sps:$4 sm:$0xff]   ;;  %v2879_v5 = vld [vmem:[%s4344_s1 + $0x54] ss:$8 sps:$4 sm:$0xff]   ;;  %v2881_v7 = vld [vmem:[%s4344_s1 + $0x50] ss:$8 sps:$4 sm:$0xff]  }
  0x1d   : > { %1017 = vmatprep.subr.bf16.mxu0 %v3065_v0  ;;  %2795 = vmatprep.subr.bf16.mxu1 %v3065_v0  ;;  %v2882_v6 = vld [vmem:[%s4344_s1 + $0x254] ss:$8 sps:$4 sm:$0xff]   ;;  %v2884_v8 = vld [vmem:[%s4344_s1 + $0x250] ss:$8 sps:$4 sm:$0xff]   ;;  %v2885_v9 = vld [vmem:[%s4344_s1 + $0x64] ss:$8 sps:$4 sm:$0xff]  }
  0x1e   : > { %v2888_v10 = vld [vmem:[%s4344_s1 + $0x264] ss:$8 sps:$4 sm:$0xff]   ;;  %v2887_v11 = vld [vmem:[%s4344_s1 + $0x60] ss:$8 sps:$4 sm:$0xff]   ;;  %v2891_v13 = vld [vmem:[%s4344_s1 + $0x74] ss:$8 sps:$4 sm:$0xff]  }
  0x1f   : > { %v2890_v12 = vld [vmem:[%s4344_s1 + $0x260] ss:$8 sps:$4 sm:$0xff]   ;;  %v2893_v15 = vld [vmem:[%s4344_s1 + $0x70] ss:$8 sps:$4 sm:$0xff]   ;;  %v2900_v18 = vld [vmem:[%s4344_s1 + $0x284] ss:$8 sps:$4 sm:$0xff]  }
  0x20   : > { %1018 = vmatpush1.bf16.msra.mxu0 %v230_v14  ;;  %2811 = vmatpush1.bf16.msra.mxu1 %v230_v14  ;;  %v2894_v14 = vld [vmem:[%s4344_s1 + $0x274] ss:$8 sps:$4 sm:$0xff]   ;;  %v2896_v16 = vld [vmem:[%s4344_s1 + $0x270] ss:$8 sps:$4 sm:$0xff]   ;;  %v2899_v19 = vld [vmem:[%s4344_s1 + $0x80] ss:$8 sps:$4 sm:$0xff]  }
  0x21   : > { %1019 = vmatprep.subr.bf16.mxu0 %v3065_v0  ;;  %2796 = vmatprep.subr.bf16.mxu1 %v3065_v0  ;;  %v2903_v21 = vld [vmem:[%s4344_s1 + $0x94] ss:$8 sps:$4 sm:$0xff]   ;;  %v2908_v24 = vld [vmem:[%s4344_s1 + $0x290] ss:$8 sps:$4 sm:$0xff]   ;;  %v2909_v25 = vld [vmem:[%s4344_s1 + $0xa4] ss:$8 sps:$4 sm:$0xff]  }
  0x22   : > { %v2906_v22 = vld [vmem:[%s4344_s1 + $0x294] ss:$8 sps:$4 sm:$0xff]   ;;  %v2911_v27 = vld [vmem:[%s4344_s1 + $0xa0] ss:$8 sps:$4 sm:$0xff]   ;;  %v2917_v31 = vld [vmem:[%s4344_s1 + $0xb0] ss:$8 sps:$4 sm:$0xff]  }
  0x23   : > { %v2914_v28 = vld [vmem:[%s4344_s1 + $0x2a0] ss:$8 sps:$4 sm:$0xff]   ;;  %v2918_v30 = vld [vmem:[%s4344_s1 + $0x2b4] ss:$8 sps:$4 sm:$0xff]   ;;  %v2921_v33 = vld [vmem:[%s4344_s1 + $0xc4] ss:$8 sps:$4 sm:$0xff]  }
  0x24   : > { %1020 = vmatpush1.bf16.msra.mxu0 %v231_v17  ;;  %2812 = vmatpush1.bf16.msra.mxu1 %v231_v17  ;;  %v2897_v17 = vld [vmem:[%s4344_s1 + $0x84] ss:$8 sps:$4 sm:$0xff]   ;;  %v2926_v36 = vld [vmem:[%s4344_s1 + $0x2c0] ss:$8 sps:$4 sm:$0xff]   ;;  %v2927_v37 = vld [vmem:[%s4344_s1 + $0xd4] ss:$8 sps:$4 sm:$0xff]  }
  0x25   : > { %1021 = vmatprep.subr.bf16.mxu0 %v3065_v0  ;;  %2797 = vmatprep.subr.bf16.mxu1 %v3065_v0  ;;  %v2924_v34 = vld [vmem:[%s4344_s1 + $0x2c4] ss:$8 sps:$4 sm:$0xff]   ;;  %v2930_v38 = vld [vmem:[%s4344_s1 + $0x2d4] ss:$8 sps:$4 sm:$0xff]   ;;  %v2932_v40 = vld [vmem:[%s4344_s1 + $0x2d0] ss:$8 sps:$4 sm:$0xff]  }
  0x26   : > { %v2933_v41 = vld [vmem:[%s4344_s1 + $0xe4] ss:$8 sps:$4 sm:$0xff]   ;;  %v2938_v44 = vld [vmem:[%s4344_s1 + $0x2e0] ss:$8 sps:$4 sm:$0xff]   ;;  %v2942_v46 = vld [vmem:[%s4344_s1 + $0x2f4] ss:$8 sps:$4 sm:$0xff]  }
  0x27   : > { %v2936_v42 = vld [vmem:[%s4344_s1 + $0x2e4] ss:$8 sps:$4 sm:$0xff]   ;;  %v2941_v47 = vld [vmem:[%s4344_s1 + $0xf0] ss:$8 sps:$4 sm:$0xff]  }
  0x28   : > { %1022 = vmatpush1.bf16.msra.mxu0 %v232_v20  ;;  %2813 = vmatpush1.bf16.msra.mxu1 %v232_v20  ;;  %v2902_v20 = vld [vmem:[%s4344_s1 + $0x280] ss:$8 sps:$4 sm:$0xff]   ;;  %v2944_v48 = vld [vmem:[%s4344_s1 + $0x2f0] ss:$8 sps:$4 sm:$0xff]  }
  0x29   : > { %1023 = vmatprep.subr.bf16.mxu0 %v3065_v0  ;;  %2798 = vmatprep.subr.bf16.mxu1 %v3065_v0 }
  0x2c   : > { %1024 = vmatpush1.bf16.msra.mxu0 %v233_v23  ;;  %2814 = vmatpush1.bf16.msra.mxu1 %v233_v23  ;;  %v2905_v23 = vld [vmem:[%s4344_s1 + $0x90] ss:$8 sps:$4 sm:$0xff]  }
  0x2d   : > { %1025 = vmatprep.subr.bf16.mxu0 %v3065_v0  ;;  %2799 = vmatprep.subr.bf16.mxu1 %v3065_v0 }
  0x30   : > { %1026 = vmatpush1.bf16.msra.mxu0 %v234_v26  ;;  %2815 = vmatpush1.bf16.msra.mxu1 %v234_v26  ;;  %v2912_v26 = vld [vmem:[%s4344_s1 + $0x2a4] ss:$8 sps:$4 sm:$0xff]  }
  0x31   : > { %1027 = vmatprep.subr.bf16.mxu0 %v3065_v0  ;;  %2800 = vmatprep.subr.bf16.mxu1 %v3065_v0 }
  0x34   : > { %1028 = vmatpush1.bf16.msra.mxu0 %v235_v29  ;;  %2816 = vmatpush1.bf16.msra.mxu1 %v235_v29  ;;  %v2915_v29 = vld [vmem:[%s4344_s1 + $0xb4] ss:$8 sps:$4 sm:$0xff]  }
  0x35   : > { %1029 = vmatprep.subr.bf16.mxu0 %v3065_v0  ;;  %2801 = vmatprep.subr.bf16.mxu1 %v3065_v0 }
  0x38   : > { %1030 = vmatpush1.bf16.msra.mxu0 %v236_v32  ;;  %2817 = vmatpush1.bf16.msra.mxu1 %v236_v32  ;;  %v2920_v32 = vld [vmem:[%s4344_s1 + $0x2b0] ss:$8 sps:$4 sm:$0xff]  }
  0x39   : > { %1031 = vmatprep.subr.bf16.mxu0 %v3065_v0  ;;  %2802 = vmatprep.subr.bf16.mxu1 %v3065_v0 }
  0x3c   : > { %1032 = vmatpush1.bf16.msra.mxu0 %v237_v35  ;;  %2818 = vmatpush1.bf16.msra.mxu1 %v237_v35  ;;  %v2923_v35 = vld [vmem:[%s4344_s1 + $0xc0] ss:$8 sps:$4 sm:$0xff]  }
  0x3d   : > { %1033 = vmatprep.subr.bf16.mxu0 %v3065_v0  ;;  %2803 = vmatprep.subr.bf16.mxu1 %v3065_v0 }
  0x40   : > { %1034 = vmatpush1.bf16.msra.mxu0 %v238_v39  ;;  %2819 = vmatpush1.bf16.msra.mxu1 %v238_v39  ;;  %v2929_v39 = vld [vmem:[%s4344_s1 + $0xd0] ss:$8 sps:$4 sm:$0xff]  }
  0x41   : > { %1035 = vmatprep.subr.bf16.mxu0 %v3065_v0  ;;  %2804 = vmatprep.subr.bf16.mxu1 %v3065_v0 }
  0x44   : > { %1036 = vmatpush1.bf16.msra.mxu0 %v239_v43  ;;  %2820 = vmatpush1.bf16.msra.mxu1 %v239_v43  ;;  %v2935_v43 = vld [vmem:[%s4344_s1 + $0xe0] ss:$8 sps:$4 sm:$0xff]  }
  0x45   : > { %1037 = vmatprep.subr.bf16.mxu0 %v3065_v0  ;;  %2805 = vmatprep.subr.bf16.mxu1 %v3065_v0 }
  0x48   : > { %1038 = vmatpush1.bf16.msra.mxu0 %v240_v45  ;;  %2821 = vmatpush1.bf16.msra.mxu1 %v240_v45  ;;  %v2939_v45 = vld [vmem:[%s4344_s1 + $0xf4] ss:$8 sps:$4 sm:$0xff]  }
  0x49   : > { %1039 = vmatprep.subr.bf16.mxu0 %v3065_v0  ;;  %2806 = vmatprep.subr.bf16.mxu1 %v3065_v0 }
  0x4c   : > { %1040 = vmatpush1.bf16.msra.mxu0 %v241_v49  ;;  %2822 = vmatpush1.bf16.msra.mxu1 %v241_v49  ;;  %v2945_v49 = vld [vmem:[%s4344_s1 + $0x104] ss:$8 sps:$4 sm:$0xff]  }
  0x4d   : > { %1041 = vmatprep.subr.bf16.mxu0 %v3065_v0  ;;  %2807 = vmatprep.subr.bf16.mxu1 %v3065_v0  ;;  %v2872_v0 = vld [vmem:[%s4344_s1 + $0x230] ss:$8 sps:$4 sm:$0xff]  }
  0x50   : > { %1042 = vmatpush1.bf16.msra.mxu0 %v242_v50  ;;  %2823 = vmatpush1.bf16.msra.mxu1 %v242_v50  ;;  %v2948_v50 = vld [vmem:[%s4344_s1 + $0x304] ss:$8 sps:$4 sm:$0xff]  }
  0x53   : > { %1044 = vmatmul.mubr.bf16.vlgmr.msra.gmra.mrb[0].mxu0 %v2849_v51  ;;  %1300 = vmatmul.mubr.bf16.vlgmr.msra.gmra.mrb[0].mxu1 %v2852_v52  ;;  %v2947_v51 = vld [vmem:[%s4344_s1 + $0x100] ss:$8 sps:$4 sm:$0xff]  }
  0x54   : > { %1051 = vmatprep.mubr.bf16.mxu0 %v2855_v53  ;;  %1307 = vmatprep.mubr.bf16.mxu1 %v2858_v54  ;;  %v2950_v52 = vld [vmem:[%s4344_s1 + $0x300] ss:$8 sps:$4 sm:$0xff]   ;;  %v2951_v53 = vld [vmem:[%s4344_s1 + $0x114] ss:$8 sps:$4 sm:$0xff]  }
  0x55   : > { %v2954_v54 = vld [vmem:[%s4344_s1 + $0x314] ss:$8 sps:$4 sm:$0xff]  }
  0x5b   : > { %1052 = vmatmul.mubr.bf16.gmra.mrb[4].mxu0 %v2857_v55  ;;  %1308 = vmatmul.mubr.bf16.gmra.mrb[4].mxu1 %v2860_v56  ;;  %v2953_v55 = vld [vmem:[%s4344_s1 + $0x110] ss:$8 sps:$4 sm:$0xff]  }
  0x5c   : > { %1059 = vmatprep.mubr.bf16.mxu0 %v2861_v57  ;;  %1315 = vmatprep.mubr.bf16.mxu1 %v2864_v58  ;;  %v2956_v56 = vld [vmem:[%s4344_s1 + $0x310] ss:$8 sps:$4 sm:$0xff]   ;;  %v2957_v57 = vld [vmem:[%s4344_s1 + $0x124] ss:$8 sps:$4 sm:$0xff]  }
  0x5d   : > { %v2960_v58 = vld [vmem:[%s4344_s1 + $0x324] ss:$8 sps:$4 sm:$0xff]  }
  0x63   : > { %1060 = vmatmul.mubr.bf16.gmra.mrb[8].mxu0 %v2863_v59  ;;  %1316 = vmatmul.mubr.bf16.gmra.mrb[8].mxu1 %v2866_v60  ;;  %v2959_v59 = vld [vmem:[%s4344_s1 + $0x120] ss:$8 sps:$4 sm:$0xff]  }
  0x64   : > { %1067 = vmatprep.mubr.bf16.mxu0 %v2867_v61  ;;  %1323 = vmatprep.mubr.bf16.mxu1 %v2870_v62  ;;  %v2962_v60 = vld [vmem:[%s4344_s1 + $0x320] ss:$8 sps:$4 sm:$0xff]   ;;  %v2963_v61 = vld [vmem:[%s4344_s1 + $0x134] ss:$8 sps:$4 sm:$0xff]  }
  0x65   : > { %v2966_v62 = vld [vmem:[%s4344_s1 + $0x334] ss:$8 sps:$4 sm:$0xff]  }
  0x6b   : > { %1068 = vmatmul.mubr.bf16.gmra.mrb[12].mxu0 %v2869_v63  ;;  %1324 = vmatmul.mubr.bf16.gmra.mrb[12].mxu1 %v2872_v0  ;;  %v2965_v63 = vld [vmem:[%s4344_s1 + $0x130] ss:$8 sps:$4 sm:$0xff]  }
  0x6c   : > { %1075 = vmatprep.mubr.bf16.mxu0 %v2873_v1  ;;  %1331 = vmatprep.mubr.bf16.mxu1 %v2876_v2  ;;  %v2968_v0 = vld [vmem:[%s4344_s1 + $0x330] ss:$8 sps:$4 sm:$0xff]   ;;  %v2969_v1 = vld [vmem:[%s4344_s1 + $0x144] ss:$8 sps:$4 sm:$0xff]  }
  0x6d   : > { %v2972_v2 = vld [vmem:[%s4344_s1 + $0x344] ss:$8 sps:$4 sm:$0xff]  }
  0x73   : > { %1076 = vmatmul.mubr.bf16.gmra.mrb[16].mxu0 %v2875_v3  ;;  %1332 = vmatmul.mubr.bf16.gmra.mrb[16].mxu1 %v2878_v4  ;;  %v2971_v3 = vld [vmem:[%s4344_s1 + $0x140] ss:$8 sps:$4 sm:$0xff]  }
  0x74   : > { %1083 = vmatprep.mubr.bf16.mxu0 %v2879_v5  ;;  %1339 = vmatprep.mubr.bf16.mxu1 %v2882_v6  ;;  %v2974_v4 = vld [vmem:[%s4344_s1 + $0x340] ss:$8 sps:$4 sm:$0xff]   ;;  %v2975_v5 = vld [vmem:[%s4344_s1 + $0x154] ss:$8 sps:$4 sm:$0xff]  }
  0x75   : > { %v2978_v6 = vld [vmem:[%s4344_s1 + $0x354] ss:$8 sps:$4 sm:$0xff]  }
  0x7b   : > { %1084 = vmatmul.mubr.bf16.gmra.mrb[20].mxu0 %v2881_v7  ;;  %1340 = vmatmul.mubr.bf16.gmra.mrb[20].mxu1 %v2884_v8  ;;  %v2977_v7 = vld [vmem:[%s4344_s1 + $0x150] ss:$8 sps:$4 sm:$0xff]  }
  0x7c   : > { %1091 = vmatprep.mubr.bf16.mxu0 %v2885_v9  ;;  %1347 = vmatprep.mubr.bf16.mxu1 %v2888_v10  ;;  %v2980_v8 = vld [vmem:[%s4344_s1 + $0x350] ss:$8 sps:$4 sm:$0xff]   ;;  %v2981_v9 = vld [vmem:[%s4344_s1 + $0x164] ss:$8 sps:$4 sm:$0xff]  }
  0x7d   : > { %v2984_v10 = vld [vmem:[%s4344_s1 + $0x364] ss:$8 sps:$4 sm:$0xff]  }
  0x83   : > { %1092 = vmatmul.mubr.bf16.gmra.mrb[24].mxu0 %v2887_v11  ;;  %1348 = vmatmul.mubr.bf16.gmra.mrb[24].mxu1 %v2890_v12  ;;  %v2983_v11 = vld [vmem:[%s4344_s1 + $0x160] ss:$8 sps:$4 sm:$0xff]  }
  0x84   : > { %1099 = vmatprep.mubr.bf16.mxu0 %v2891_v13  ;;  %1355 = vmatprep.mubr.bf16.mxu1 %v2894_v14  ;;  %v2986_v12 = vld [vmem:[%s4344_s1 + $0x360] ss:$8 sps:$4 sm:$0xff]   ;;  %v2987_v13 = vld [vmem:[%s4344_s1 + $0x174] ss:$8 sps:$4 sm:$0xff]  }
  0x85   : > { %v2990_v14 = vld [vmem:[%s4344_s1 + $0x374] ss:$8 sps:$4 sm:$0xff]  }
  0x8b   : > { %1100 = vmatmul.mubr.bf16.gmra.mrb[28].mxu0 %v2893_v15  ;;  %1356 = vmatmul.mubr.bf16.gmra.mrb[28].mxu1 %v2896_v16  ;;  %v2989_v15 = vld [vmem:[%s4344_s1 + $0x170] ss:$8 sps:$4 sm:$0xff]  }
  0x8c   : > { %1107 = vmatprep.mubr.bf16.mxu0 %v2897_v17  ;;  %1363 = vmatprep.mubr.bf16.mxu1 %v2900_v18  ;;  %v2992_v16 = vld [vmem:[%s4344_s1 + $0x370] ss:$8 sps:$4 sm:$0xff]   ;;  %v2993_v17 = vld [vmem:[%s4344_s1 + $0x184] ss:$8 sps:$4 sm:$0xff]  }
  0x8d   : > { %v2996_v18 = vld [vmem:[%s4344_s1 + $0x384] ss:$8 sps:$4 sm:$0xff]  }
  0x93   : > { %1108 = vmatmul.mubr.bf16.gmra.mrb[32].mxu0 %v2899_v19  ;;  %1364 = vmatmul.mubr.bf16.gmra.mrb[32].mxu1 %v2902_v20  ;;  %v2995_v19 = vld [vmem:[%s4344_s1 + $0x180] ss:$8 sps:$4 sm:$0xff]  }
  0x94   : > { %1115 = vmatprep.mubr.bf16.mxu0 %v2903_v21  ;;  %1371 = vmatprep.mubr.bf16.mxu1 %v2906_v22  ;;  %v2998_v20 = vld [vmem:[%s4344_s1 + $0x380] ss:$8 sps:$4 sm:$0xff]   ;;  %v2999_v21 = vld [vmem:[%s4344_s1 + $0x194] ss:$8 sps:$4 sm:$0xff]  }
  0x95   : > { %v3002_v22 = vld [vmem:[%s4344_s1 + $0x394] ss:$8 sps:$4 sm:$0xff]  }
  0x9b   : > { %1116 = vmatmul.mubr.bf16.gmra.mrb[36].mxu0 %v2905_v23  ;;  %1372 = vmatmul.mubr.bf16.gmra.mrb[36].mxu1 %v2908_v24  ;;  %v3001_v23 = vld [vmem:[%s4344_s1 + $0x190] ss:$8 sps:$4 sm:$0xff]  }
  0x9c   : > { %1123 = vmatprep.mubr.bf16.mxu0 %v2909_v25  ;;  %1379 = vmatprep.mubr.bf16.mxu1 %v2912_v26  ;;  %v3004_v24 = vld [vmem:[%s4344_s1 + $0x390] ss:$8 sps:$4 sm:$0xff]   ;;  %v3005_v25 = vld [vmem:[%s4344_s1 + $0x1a4] ss:$8 sps:$4 sm:$0xff]  }
  0x9d   : > { %v3008_v26 = vld [vmem:[%s4344_s1 + $0x3a4] ss:$8 sps:$4 sm:$0xff]  }
  0xa3   : > { %1124 = vmatmul.mubr.bf16.gmra.mrb[40].mxu0 %v2911_v27  ;;  %1380 = vmatmul.mubr.bf16.gmra.mrb[40].mxu1 %v2914_v28  ;;  %v3007_v27 = vld [vmem:[%s4344_s1 + $0x1a0] ss:$8 sps:$4 sm:$0xff]  }
  0xa4   : > { %1131 = vmatprep.mubr.bf16.mxu0 %v2915_v29  ;;  %1387 = vmatprep.mubr.bf16.mxu1 %v2918_v30  ;;  %v3010_v28 = vld [vmem:[%s4344_s1 + $0x3a0] ss:$8 sps:$4 sm:$0xff]   ;;  %v3011_v29 = vld [vmem:[%s4344_s1 + $0x1b4] ss:$8 sps:$4 sm:$0xff]  }
  0xa5   : > { %v3014_v30 = vld [vmem:[%s4344_s1 + $0x3b4] ss:$8 sps:$4 sm:$0xff]  }
  0xab   : > { %1132 = vmatmul.mubr.bf16.gmra.mrb[44].mxu0 %v2917_v31  ;;  %1388 = vmatmul.mubr.bf16.gmra.mrb[44].mxu1 %v2920_v32 }
  0xac   : > { %1139 = vmatprep.mubr.bf16.mxu0 %v2921_v33  ;;  %1395 = vmatprep.mubr.bf16.mxu1 %v2924_v34  ;;  %v3013_v33 = vld [vmem:[%s4344_s1 + $0x1b0] ss:$8 sps:$4 sm:$0xff]  }
  0xb3   : > { %1140 = vmatmul.mubr.bf16.gmra.mrb[48].mxu0 %v2923_v35  ;;  %1396 = vmatmul.mubr.bf16.gmra.mrb[48].mxu1 %v2926_v36 }
  0xb4   : > { %1147 = vmatprep.mubr.bf16.mxu0 %v2927_v37  ;;  %1403 = vmatprep.mubr.bf16.mxu1 %v2930_v38  ;;  %v3016_v37 = vld [vmem:[%s4344_s1 + $0x3b0] ss:$8 sps:$4 sm:$0xff]  }
  0xbb   : > { %1148 = vmatmul.mubr.bf16.gmra.mrb[52].mxu0 %v2929_v39  ;;  %1404 = vmatmul.mubr.bf16.gmra.mrb[52].mxu1 %v2932_v40  ;;  %v3017_v40 = vld [vmem:[%s4344_s1 + $0x1c4] ss:$8 sps:$4 sm:$0xff]  }
  0xbc   : > { %1155 = vmatprep.mubr.bf16.mxu0 %v2933_v41  ;;  %1411 = vmatprep.mubr.bf16.mxu1 %v2936_v42 }
  0xc3   : > { %1156 = vmatmul.mubr.bf16.gmra.mrb[56].mxu0 %v2935_v43  ;;  %1412 = vmatmul.mubr.bf16.gmra.mrb[56].mxu1 %v2938_v44  ;;  %v3020_v44 = vld [vmem:[%s4344_s1 + $0x3c4] ss:$8 sps:$4 sm:$0xff]  }
  0xc4   : > { %1163 = vmatprep.mubr.bf16.mxu0 %v2939_v45  ;;  %1419 = vmatprep.mubr.bf16.mxu1 %v2942_v46 }
  0xcb   : > { %1164 = vmatmul.mubr.bf16.gmra.mrb[60].mxu0 %v2941_v47  ;;  %1420 = vmatmul.mubr.bf16.gmra.mrb[60].mxu1 %v2944_v48  ;;  %v3019_v48 = vld [vmem:[%s4344_s1 + $0x1c0] ss:$8 sps:$4 sm:$0xff]  }
  0xcc   : > { %1171 = vmatprep.mubr.bf16.mxu0 %v2945_v49  ;;  %1427 = vmatprep.mubr.bf16.mxu1 %v2948_v50 }
  0xd3   : > { %1172 = vmatmul.mubr.bf16.gmra.mrb[64].mxu0 %v2947_v51  ;;  %1428 = vmatmul.mubr.bf16.gmra.mrb[64].mxu1 %v2950_v52 }
  0xd4   : > { %1179 = vmatprep.mubr.bf16.mxu0 %v2951_v53  ;;  %1435 = vmatprep.mubr.bf16.mxu1 %v2954_v54  ;;  %v3022_v53 = vld [vmem:[%s4344_s1 + $0x3c0] ss:$8 sps:$4 sm:$0xff]  }
  0xdb   : > { %1180 = vmatmul.mubr.bf16.gmra.mrb[68].mxu0 %v2953_v55  ;;  %1436 = vmatmul.mubr.bf16.gmra.mrb[68].mxu1 %v2956_v56  ;;  %v3023_v56 = vld [vmem:[%s4344_s1 + $0x1d4] ss:$8 sps:$4 sm:$0xff]  }
  0xdc   : > { %1187 = vmatprep.mubr.bf16.mxu0 %v2957_v57  ;;  %1443 = vmatprep.mubr.bf16.mxu1 %v2960_v58 }
  0xe3   : > { %1188 = vmatmul.mubr.bf16.gmra.mrb[72].mxu0 %v2959_v59  ;;  %1444 = vmatmul.mubr.bf16.gmra.mrb[72].mxu1 %v2962_v60  ;;  %v3026_v60 = vld [vmem:[%s4344_s1 + $0x3d4] ss:$8 sps:$4 sm:$0xff]  }
  0xe4   : > { %1195 = vmatprep.mubr.bf16.mxu0 %v2963_v61  ;;  %1451 = vmatprep.mubr.bf16.mxu1 %v2966_v62 }
  0xeb   : > { %1196 = vmatmul.mubr.bf16.gmra.mrb[76].mxu0 %v2965_v63  ;;  %1452 = vmatmul.mubr.bf16.gmra.mrb[76].mxu1 %v2968_v0  ;;  %v3025_v0 = vld [vmem:[%s4344_s1 + $0x1d0] ss:$8 sps:$4 sm:$0xff]  }
  0xec   : > { %1203 = vmatprep.mubr.bf16.mxu0 %v2969_v1  ;;  %1459 = vmatprep.mubr.bf16.mxu1 %v2972_v2 }
  0xf3   : > { %1204 = vmatmul.mubr.bf16.gmra.mrb[80].mxu0 %v2971_v3  ;;  %1460 = vmatmul.mubr.bf16.gmra.mrb[80].mxu1 %v2974_v4 }
  0xf4   : > { %1211 = vmatprep.mubr.bf16.mxu0 %v2975_v5  ;;  %1467 = vmatprep.mubr.bf16.mxu1 %v2978_v6  ;;  %v3028_v5 = vld [vmem:[%s4344_s1 + $0x3d0] ss:$8 sps:$4 sm:$0xff]  }
  0xfb   : > { %1212 = vmatmul.mubr.bf16.gmra.mrb[84].mxu0 %v2977_v7  ;;  %1468 = vmatmul.mubr.bf16.gmra.mrb[84].mxu1 %v2980_v8  ;;  %v3029_v8 = vld [vmem:[%s4344_s1 + $0x1e4] ss:$8 sps:$4 sm:$0xff]  }
  0xfc   : > { %1219 = vmatprep.mubr.bf16.mxu0 %v2981_v9  ;;  %1475 = vmatprep.mubr.bf16.mxu1 %v2984_v10 }
 0x103   : > { %1220 = vmatmul.mubr.bf16.gmra.mrb[88].mxu0 %v2983_v11  ;;  %1476 = vmatmul.mubr.bf16.gmra.mrb[88].mxu1 %v2986_v12  ;;  %v3032_v12 = vld [vmem:[%s4344_s1 + $0x3e4] ss:$8 sps:$4 sm:$0xff]  }
 0x104   : > { %1227 = vmatprep.mubr.bf16.mxu0 %v2987_v13  ;;  %1483 = vmatprep.mubr.bf16.mxu1 %v2990_v14 }
 0x10b   : > { %1228 = vmatmul.mubr.bf16.gmra.mrb[92].mxu0 %v2989_v15  ;;  %1484 = vmatmul.mubr.bf16.gmra.mrb[92].mxu1 %v2992_v16  ;;  %v3031_v16 = vld [vmem:[%s4344_s1 + $0x1e0] ss:$8 sps:$4 sm:$0xff]  }
 0x10c   : > { %1235 = vmatprep.mubr.bf16.mxu0 %v2993_v17  ;;  %1491 = vmatprep.mubr.bf16.mxu1 %v2996_v18 }
 0x113   : > { %1236 = vmatmul.mubr.bf16.gmra.mrb[96].mxu0 %v2995_v19  ;;  %1492 = vmatmul.mubr.bf16.gmra.mrb[96].mxu1 %v2998_v20 }
 0x114   : > { %1243 = vmatprep.mubr.bf16.mxu0 %v2999_v21  ;;  %1499 = vmatprep.mubr.bf16.mxu1 %v3002_v22  ;;  %v3034_v21 = vld [vmem:[%s4344_s1 + $0x3e0] ss:$8 sps:$4 sm:$0xff]  }
 0x11b   : > { %1244 = vmatmul.mubr.bf16.gmra.mrb[100].mxu0 %v3001_v23  ;;  %1500 = vmatmul.mubr.bf16.gmra.mrb[100].mxu1 %v3004_v24  ;;  %v3035_v24 = vld [vmem:[%s4344_s1 + $0x1f4] ss:$8 sps:$4 sm:$0xff]  }
 0x11c   : > { %1251 = vmatprep.mubr.bf16.mxu0 %v3005_v25  ;;  %1507 = vmatprep.mubr.bf16.mxu1 %v3008_v26 }
 0x123   : > { %1252 = vmatmul.mubr.bf16.gmra.mrb[104].mxu0 %v3007_v27  ;;  %1508 = vmatmul.mubr.bf16.gmra.mrb[104].mxu1 %v3010_v28  ;;  %v3038_v28 = vld [vmem:[%s4344_s1 + $0x3f4] ss:$8 sps:$4 sm:$0xff]  }
 0x124   : > { %1259 = vmatprep.mubr.bf16.mxu0 %v3011_v29  ;;  %1515 = vmatprep.mubr.bf16.mxu1 %v3014_v30 }
 0x126   : > { %v1045_v31 = vpop.f32.mrb[0].mxu0  ;;  %v1301_v32 = vpop.f32.mrb[0].mxu1 }
 0x127   : > { %v1047_v34 = vpop.f32.mrb[1].mxu0  ;;  %v1303_v35 = vpop.f32.mrb[1].mxu1  ;;  %v1557_v36 = vsel %vm1556_vm0, %v1045_v31, -inf  ;;  %v1749_v45 = vsel %vm1556_vm0, %v1301_v32, -inf  ;;  %v3037_v32 = vld [vmem:[%s4344_s1 + $0x1f0] ss:$8 sps:$4 sm:$0xff]  }
 0x128   : > { %v1304_v38 = vpop.f32.mrb[2].mxu1  ;;  %1558 = vmax.xlane.f32.xlu0 %v1557_v36  ;;  %v1048_v39 = vpop.f32.mrb[2].mxu0 }
 0x129   : > { %v1050_v41 = vpop.f32.mrb[3].mxu0  ;;  %v1306_v42 = vpop.f32.mrb[3].mxu1  ;;  %v1752_v43 = vsel %vm1556_vm0, %v1304_v38, -inf  ;;  %v1560_v50 = vsel %vm1556_vm0, %v1048_v39, -inf }
 0x12a   : > { %1753 = vmax.xlane.f32.xlu1 %v1752_v43 }
 0x12b   : > { %1260 = vmatmul.mubr.bf16.gmra.mrb[108].mxu0 %v3013_v33  ;;  %1516 = vmatmul.mubr.bf16.gmra.mrb[108].mxu1 %v3016_v37  ;;  %v3040_v37 = vld [vmem:[%s4344_s1 + $0x3f0] ss:$8 sps:$4 sm:$0xff]  }
 0x12c   : > { %1750 = vmax.xlane.f32.xlu0 %v1749_v45  ;;  %1267 = vmatprep.mubr.bf16.mxu0 %v3017_v40 }
 0x12d   : > { %1523 = vmatprep.mubr.bf16.mxu1 %v3020_v44 }
 0x12e   : > { %v1053_v46 = vpop.f32.mrb[4].mxu0  ;;  %v1309_v47 = vpop.f32.mrb[4].mxu1 }
 0x12f   : > { %v1055_v49 = vpop.f32.mrb[5].mxu0  ;;  %v1563_v51 = vsel %vm1556_vm0, %v1053_v46, -inf  ;;  %v1311_v52 = vpop.f32.mrb[5].mxu1  ;;  %v1755_v59 = vsel %vm1556_vm0, %v1309_v47, -inf }
 0x130   : > { %1561 = vmax.xlane.f32.xlu0 %v1560_v50  ;;  %1564 = vmax.xlane.f32.xlu1 %v1563_v51  ;;  %v1056_v54 = vpop.f32.mrb[6].mxu0  ;;  %v1312_v55 = vpop.f32.mrb[6].mxu1 }
 0x131   : > { %v1058_v57 = vpop.f32.mrb[7].mxu0  ;;  %v1314_v58 = vpop.f32.mrb[7].mxu1  ;;  %v1566_v61 = vsel %vm1556_vm0, %v1056_v54, -inf  ;;  %v1758_v2 = vsel %vm1556_vm0, %v1312_v55, -inf }
 0x133   : > { %1268 = vmatmul.mubr.bf16.gmra.mrb[112].mxu0 %v3019_v48  ;;  %1524 = vmatmul.mubr.bf16.gmra.mrb[112].mxu1 %v3022_v53 }
 0x134   : > { %1756 = vmax.xlane.f32.xlu0 %v1755_v59  ;;  %1567 = vmax.xlane.f32.xlu1 %v1566_v61 }
 0x135   : > { %1275 = vmatprep.mubr.bf16.mxu0 %v3023_v56  ;;  %1531 = vmatprep.mubr.bf16.mxu1 %v3026_v60 }
 0x136   : > { %v1061_v62 = vpop.f32.mrb[8].mxu0  ;;  %v1317_v63 = vpop.f32.mrb[8].mxu1 }
 0x137   : > { %v1063_v1 = vpop.f32.mrb[9].mxu0  ;;  %v1569_v3 = vsel %vm1556_vm0, %v1061_v62, -inf  ;;  %v1319_v4 = vpop.f32.mrb[9].mxu1  ;;  %v1761_v11 = vsel %vm1556_vm0, %v1317_v63, -inf }
 0x138   : > { %1759 = vmax.xlane.f32.xlu1 %v1758_v2  ;;  %1570 = vmax.xlane.f32.xlu0 %v1569_v3  ;;  %v1064_v6 = vpop.f32.mrb[10].mxu0  ;;  %v1320_v7 = vpop.f32.mrb[10].mxu1 }
 0x139   : > { %v1066_v9 = vpop.f32.mrb[11].mxu0  ;;  %v1322_v10 = vpop.f32.mrb[11].mxu1  ;;  %v1572_v13 = vsel %vm1556_vm0, %v1064_v6, -inf  ;;  %v1764_v18 = vsel %vm1556_vm0, %v1320_v7, -inf }
 0x13b   : > { %1276 = vmatmul.mubr.bf16.gmra.mrb[116].mxu0 %v3025_v0  ;;  %1532 = vmatmul.mubr.bf16.gmra.mrb[116].mxu1 %v3028_v5 }
 0x13c   : > { %1762 = vmax.xlane.f32.xlu0 %v1761_v11  ;;  %1573 = vmax.xlane.f32.xlu1 %v1572_v13 }
 0x13d   : > { %1283 = vmatprep.mubr.bf16.mxu0 %v3029_v8  ;;  %1539 = vmatprep.mubr.bf16.mxu1 %v3032_v12 }
 0x13e   : > { %v1069_v14 = vpop.f32.mrb[12].mxu0  ;;  %v1325_v15 = vpop.f32.mrb[12].mxu1 }
 0x13f   : > { %v1071_v17 = vpop.f32.mrb[13].mxu0  ;;  %v1575_v19 = vsel %vm1556_vm0, %v1069_v14, -inf  ;;  %v1327_v20 = vpop.f32.mrb[13].mxu1  ;;  %v1767_v27 = vsel %vm1556_vm0, %v1325_v15, -inf }
 0x140   : > { %1765 = vmax.xlane.f32.xlu1 %v1764_v18  ;;  %1576 = vmax.xlane.f32.xlu0 %v1575_v19  ;;  %v1072_v22 = vpop.f32.mrb[14].mxu0  ;;  %v1328_v23 = vpop.f32.mrb[14].mxu1 }
 0x141   : > { %v1074_v25 = vpop.f32.mrb[15].mxu0  ;;  %v1330_v26 = vpop.f32.mrb[15].mxu1  ;;  %v1578_v29 = vsel %vm1556_vm0, %v1072_v22, -inf  ;;  %v1770_v34 = vsel %vm1556_vm0, %v1328_v23, -inf }
 0x143   : > { %1284 = vmatmul.mubr.bf16.gmra.mrb[120].mxu0 %v3031_v16  ;;  %1540 = vmatmul.mubr.bf16.gmra.mrb[120].mxu1 %v3034_v21 }
 0x144   : > { %1768 = vmax.xlane.f32.xlu0 %v1767_v27  ;;  %1579 = vmax.xlane.f32.xlu1 %v1578_v29 }
 0x145   : > { %1291 = vmatprep.mubr.bf16.mxu0 %v3035_v24  ;;  %1547 = vmatprep.mubr.bf16.mxu1 %v3038_v28 }
 0x146   : > { %v1077_v30 = vpop.f32.mrb[16].mxu0  ;;  %v1333_v31 = vpop.f32.mrb[16].mxu1 }
 0x147   : > { %v1079_v33 = vpop.f32.mrb[17].mxu0  ;;  %v1581_v35 = vsel %vm1556_vm0, %v1077_v30, -inf  ;;  %v1335_v36 = vpop.f32.mrb[17].mxu1  ;;  %v1773_v42 = vsel %vm1556_vm0, %v1333_v31, -inf }
 0x148   : > { %1771 = vmax.xlane.f32.xlu1 %v1770_v34  ;;  %1582 = vmax.xlane.f32.xlu0 %v1581_v35  ;;  %v1080_v38 = vpop.f32.mrb[18].mxu0  ;;  %v1336_v39 = vpop.f32.mrb[18].mxu1 }
 0x149   : > { %v1082_v40 = vpop.f32.mrb[19].mxu0  ;;  %v1338_v41 = vpop.f32.mrb[19].mxu1  ;;  %v1584_v43 = vsel %vm1556_vm0, %v1080_v38, -inf  ;;  %v1776_v47 = vsel %vm1556_vm0, %v1336_v39, -inf }
 0x14b   : > { %1292 = vmatmul.mubr.bf16.gmra.mrb[124].mxu0 %v3037_v32  ;;  %1548 = vmatmul.mubr.bf16.gmra.mrb[124].mxu1 %v3040_v37 }
 0x14c   : > { %1774 = vmax.xlane.f32.xlu0 %v1773_v42  ;;  %1585 = vmax.xlane.f32.xlu1 %v1584_v43 }
 0x14e   : > { %v1085_v44 = vpop.f32.mrb[20].mxu0  ;;  %v1341_v45 = vpop.f32.mrb[20].mxu1 }
 0x14f   : > { %v1087_v46 = vpop.f32.mrb[21].mxu0  ;;  %v1587_v48 = vsel %vm1556_vm0, %v1085_v44, -inf  ;;  %v1343_v49 = vpop.f32.mrb[21].mxu1  ;;  %v1779_v54 = vsel %vm1556_vm0, %v1341_v45, -inf }
 0x150   : > { %1777 = vmax.xlane.f32.xlu1 %v1776_v47  ;;  %1588 = vmax.xlane.f32.xlu0 %v1587_v48  ;;  %v1088_v50 = vpop.f32.mrb[22].mxu0  ;;  %v1344_v51 = vpop.f32.mrb[22].mxu1 }
 0x151   : > { %v1090_v52 = vpop.f32.mrb[23].mxu0  ;;  %v1346_v53 = vpop.f32.mrb[23].mxu1  ;;  %v1590_v55 = vsel %vm1556_vm0, %v1088_v50, -inf  ;;  %v1782_v59 = vsel %vm1556_vm0, %v1344_v51, -inf }
 0x154   : > { %1780 = vmax.xlane.f32.xlu0 %v1779_v54  ;;  %1591 = vmax.xlane.f32.xlu1 %v1590_v55 }
 0x156   : > { %v1093_v56 = vpop.f32.mrb[24].mxu0  ;;  %v1349_v57 = vpop.f32.mrb[24].mxu1 }
 0x157   : > { %v1095_v58 = vpop.f32.mrb[25].mxu0  ;;  %v1593_v60 = vsel %vm1556_vm0, %v1093_v56, -inf  ;;  %v1351_v61 = vpop.f32.mrb[25].mxu1  ;;  %v1785_v2 = vsel %vm1556_vm0, %v1349_v57, -inf }
 0x158   : > { %1783 = vmax.xlane.f32.xlu1 %v1782_v59  ;;  %1594 = vmax.xlane.f32.xlu0 %v1593_v60  ;;  %v1096_v62 = vpop.f32.mrb[26].mxu0  ;;  %v1352_v63 = vpop.f32.mrb[26].mxu1 }
 0x159   : > { %v1098_v0 = vpop.f32.mrb[27].mxu0  ;;  %v1354_v1 = vpop.f32.mrb[27].mxu1  ;;  %v1596_v3 = vsel %vm1556_vm0, %v1096_v62, -inf  ;;  %v1788_v7 = vsel %vm1556_vm0, %v1352_v63, -inf }
 0x15c   : > { %1786 = vmax.xlane.f32.xlu0 %v1785_v2  ;;  %1597 = vmax.xlane.f32.xlu1 %v1596_v3 }
 0x15e   : > { %v1101_v4 = vpop.f32.mrb[28].mxu0  ;;  %v1357_v5 = vpop.f32.mrb[28].mxu1 }
 0x15f   : > { %v1103_v6 = vpop.f32.mrb[29].mxu0  ;;  %v1599_v8 = vsel %vm1556_vm0, %v1101_v4, -inf  ;;  %v1359_v9 = vpop.f32.mrb[29].mxu1  ;;  %v1791_v14 = vsel %vm1556_vm0, %v1357_v5, -inf }
 0x160   : > { %1789 = vmax.xlane.f32.xlu1 %v1788_v7  ;;  %1600 = vmax.xlane.f32.xlu0 %v1599_v8  ;;  %v1104_v10 = vpop.f32.mrb[30].mxu0  ;;  %v1360_v11 = vpop.f32.mrb[30].mxu1 }
 0x161   : > { %v1106_v12 = vpop.f32.mrb[31].mxu0  ;;  %v1362_v13 = vpop.f32.mrb[31].mxu1  ;;  %v1602_v15 = vsel %vm1556_vm0, %v1104_v10, -inf  ;;  %v1794_v19 = vsel %vm1556_vm0, %v1360_v11, -inf }
 0x164   : > { %1792 = vmax.xlane.f32.xlu0 %v1791_v14  ;;  %1603 = vmax.xlane.f32.xlu1 %v1602_v15 }
 0x166   : > { %v1109_v16 = vpop.f32.mrb[32].mxu0  ;;  %v1365_v17 = vpop.f32.mrb[32].mxu1 }
 0x167   : > { %v1111_v18 = vpop.f32.mrb[33].mxu0  ;;  %v1605_v20 = vsel %vm1556_vm0, %v1109_v16, -inf  ;;  %v1367_v21 = vpop.f32.mrb[33].mxu1  ;;  %v1797_v26 = vsel %vm1556_vm0, %v1365_v17, -inf }
 0x168   : > { %1795 = vmax.xlane.f32.xlu1 %v1794_v19  ;;  %1606 = vmax.xlane.f32.xlu0 %v1605_v20  ;;  %v1112_v22 = vpop.f32.mrb[34].mxu0  ;;  %v1368_v23 = vpop.f32.mrb[34].mxu1 }
 0x169   : > { %v1114_v24 = vpop.f32.mrb[35].mxu0  ;;  %v1370_v25 = vpop.f32.mrb[35].mxu1  ;;  %v1608_v27 = vsel %vm1556_vm0, %v1112_v22, -inf  ;;  %v1800_v31 = vsel %vm1556_vm0, %v1368_v23, -inf }
 0x16c   : > { %1798 = vmax.xlane.f32.xlu0 %v1797_v26  ;;  %1609 = vmax.xlane.f32.xlu1 %v1608_v27 }
 0x16e   : > { %v1117_v28 = vpop.f32.mrb[36].mxu0  ;;  %v1373_v29 = vpop.f32.mrb[36].mxu1 }
 0x16f   : > { %v1119_v30 = vpop.f32.mrb[37].mxu0  ;;  %v1611_v32 = vsel %vm1556_vm0, %v1117_v28, -inf  ;;  %v1375_v33 = vpop.f32.mrb[37].mxu1  ;;  %v1803_v38 = vsel %vm1556_vm0, %v1373_v29, -inf }
 0x170   : > { %1801 = vmax.xlane.f32.xlu1 %v1800_v31  ;;  %1612 = vmax.xlane.f32.xlu0 %v1611_v32  ;;  %v1120_v34 = vpop.f32.mrb[38].mxu0  ;;  %v1376_v35 = vpop.f32.mrb[38].mxu1 }
 0x171   : > { %v1122_v36 = vpop.f32.mrb[39].mxu0  ;;  %v1378_v37 = vpop.f32.mrb[39].mxu1  ;;  %v1614_v39 = vsel %vm1556_vm0, %v1120_v34, -inf  ;;  %v1806_v43 = vsel %vm1556_vm0, %v1376_v35, -inf }
 0x174   : > { %1804 = vmax.xlane.f32.xlu0 %v1803_v38  ;;  %1615 = vmax.xlane.f32.xlu1 %v1614_v39 }
 0x176   : > { %v1125_v40 = vpop.f32.mrb[40].mxu0  ;;  %v1381_v41 = vpop.f32.mrb[40].mxu1 }
 0x177   : > { %v1127_v42 = vpop.f32.mrb[41].mxu0  ;;  %v1617_v44 = vsel %vm1556_vm0, %v1125_v40, -inf  ;;  %v1383_v45 = vpop.f32.mrb[41].mxu1  ;;  %v1809_v50 = vsel %vm1556_vm0, %v1381_v41, -inf }
 0x178   : > { %1807 = vmax.xlane.f32.xlu1 %v1806_v43  ;;  %1618 = vmax.xlane.f32.xlu0 %v1617_v44  ;;  %v1128_v46 = vpop.f32.mrb[42].mxu0  ;;  %v1384_v47 = vpop.f32.mrb[42].mxu1 }
 0x179   : > { %v1130_v48 = vpop.f32.mrb[43].mxu0  ;;  %v1386_v49 = vpop.f32.mrb[43].mxu1  ;;  %v1620_v51 = vsel %vm1556_vm0, %v1128_v46, -inf  ;;  %v1812_v55 = vsel %vm1556_vm0, %v1384_v47, -inf }
 0x17c   : > { %1810 = vmax.xlane.f32.xlu0 %v1809_v50  ;;  %1621 = vmax.xlane.f32.xlu1 %v1620_v51 }
 0x17e   : > { %v1133_v52 = vpop.f32.mrb[44].mxu0  ;;  %v1389_v53 = vpop.f32.mrb[44].mxu1 }
 0x17f   : > { %v1135_v54 = vpop.f32.mrb[45].mxu0  ;;  %v1623_v56 = vsel %vm1556_vm0, %v1133_v52, -inf  ;;  %v1391_v57 = vpop.f32.mrb[45].mxu1  ;;  %v1815_v62 = vsel %vm1556_vm0, %v1389_v53, -inf }
 0x180   : > { %1813 = vmax.xlane.f32.xlu1 %v1812_v55  ;;  %1624 = vmax.xlane.f32.xlu0 %v1623_v56  ;;  %v1136_v58 = vpop.f32.mrb[46].mxu0  ;;  %v1392_v59 = vpop.f32.mrb[46].mxu1 }
 0x181   : > { %v1138_v60 = vpop.f32.mrb[47].mxu0  ;;  %v1394_v61 = vpop.f32.mrb[47].mxu1  ;;  %v1626_v63 = vsel %vm1556_vm0, %v1136_v58, -inf  ;;  %v1818_v3 = vsel %vm1556_vm0, %v1392_v59, -inf }
 0x184   : > { %1816 = vmax.xlane.f32.xlu0 %v1815_v62  ;;  %1627 = vmax.xlane.f32.xlu1 %v1626_v63 }
 0x186   : > { %v1141_v0 = vpop.f32.mrb[48].mxu0  ;;  %v1397_v1 = vpop.f32.mrb[48].mxu1 }
 0x187   : > { %v1143_v2 = vpop.f32.mrb[49].mxu0  ;;  %v1629_v4 = vsel %vm1556_vm0, %v1141_v0, -inf  ;;  %v1399_v5 = vpop.f32.mrb[49].mxu1  ;;  %v1821_v10 = vsel %vm1556_vm0, %v1397_v1, -inf }
 0x188   : > { %1819 = vmax.xlane.f32.xlu1 %v1818_v3  ;;  %1630 = vmax.xlane.f32.xlu0 %v1629_v4  ;;  %v1144_v6 = vpop.f32.mrb[50].mxu0  ;;  %v1400_v7 = vpop.f32.mrb[50].mxu1 }
 0x189   : > { %v1146_v8 = vpop.f32.mrb[51].mxu0  ;;  %v1402_v9 = vpop.f32.mrb[51].mxu1  ;;  %v1632_v11 = vsel %vm1556_vm0, %v1144_v6, -inf  ;;  %v1824_v15 = vsel %vm1556_vm0, %v1400_v7, -inf }
 0x18a   : > { %v1941_v8 = vld [vmem:[%s4345_s2] sm:$0xff] }
 0x18c   : > { %1822 = vmax.xlane.f32.xlu0 %v1821_v10  ;;  %1633 = vmax.xlane.f32.xlu1 %v1632_v11  ;;  %v2006_v10 = vld [vmem:[%s4345_s2 + $0x208] sm:$0xff] }
 0x18e   : > { %v1149_v12 = vpop.f32.mrb[52].mxu0  ;;  %v1405_v13 = vpop.f32.mrb[52].mxu1 }
 0x18f   : > { %v1151_v14 = vpop.f32.mrb[53].mxu0  ;;  %v1635_v16 = vsel %vm1556_vm0, %v1149_v12, -inf  ;;  %v1407_v17 = vpop.f32.mrb[53].mxu1  ;;  %v1827_v22 = vsel %vm1556_vm0, %v1405_v13, -inf }
 0x190   : > { %1825 = vmax.xlane.f32.xlu1 %v1824_v15  ;;  %1636 = vmax.xlane.f32.xlu0 %v1635_v16  ;;  %v1152_v18 = vpop.f32.mrb[54].mxu0  ;;  %v1408_v19 = vpop.f32.mrb[54].mxu1 }
 0x191   : > { %v1154_v20 = vpop.f32.mrb[55].mxu0  ;;  %v1410_v21 = vpop.f32.mrb[55].mxu1  ;;  %v1638_v23 = vsel %vm1556_vm0, %v1152_v18, -inf  ;;  %v1830_v27 = vsel %vm1556_vm0, %v1408_v19, -inf  ;;  %v2005_v18 = vld [vmem:[%s4345_s2 + $0x200] sm:$0xff] }
 0x194   : > { %1828 = vmax.xlane.f32.xlu0 %v1827_v22  ;;  %1639 = vmax.xlane.f32.xlu1 %v1638_v23 }
 0x196   : > { %v1157_v24 = vpop.f32.mrb[56].mxu0  ;;  %v1413_v25 = vpop.f32.mrb[56].mxu1 }
 0x197   : > { %v1159_v26 = vpop.f32.mrb[57].mxu0  ;;  %v1641_v28 = vsel %vm1556_vm0, %v1157_v24, -inf  ;;  %v1415_v29 = vpop.f32.mrb[57].mxu1  ;;  %v1833_v34 = vsel %vm1556_vm0, %v1413_v25, -inf }
 0x198   : > { %1831 = vmax.xlane.f32.xlu1 %v1830_v27  ;;  %1642 = vmax.xlane.f32.xlu0 %v1641_v28  ;;  %v1160_v30 = vpop.f32.mrb[58].mxu0  ;;  %v1416_v31 = vpop.f32.mrb[58].mxu1 }
 0x199   : > { %v1162_v32 = vpop.f32.mrb[59].mxu0  ;;  %v1418_v33 = vpop.f32.mrb[59].mxu1  ;;  %v1644_v35 = vsel %vm1556_vm0, %v1160_v30, -inf  ;;  %v1836_v39 = vsel %vm1556_vm0, %v1416_v31, -inf }
 0x19a   : > { %v1942_v32 = vld [vmem:[%s4345_s2 + $0x8] sm:$0xff]  ;;  %v1943_v33 = vld [vmem:[%s4345_s2 + $0x10] sm:$0xff] }
 0x19c   : > { %1834 = vmax.xlane.f32.xlu0 %v1833_v34  ;;  %1645 = vmax.xlane.f32.xlu1 %v1644_v35 }
 0x19e   : > { %v1165_v36 = vpop.f32.mrb[60].mxu0  ;;  %v1421_v37 = vpop.f32.mrb[60].mxu1 }
 0x19f   : > { %v1167_v38 = vpop.f32.mrb[61].mxu0  ;;  %v1647_v40 = vsel %vm1556_vm0, %v1165_v36, -inf  ;;  %v1423_v41 = vpop.f32.mrb[61].mxu1  ;;  %v1839_v46 = vsel %vm1556_vm0, %v1421_v37, -inf }
 0x1a0   : > { %1837 = vmax.xlane.f32.xlu1 %v1836_v39  ;;  %1648 = vmax.xlane.f32.xlu0 %v1647_v40  ;;  %v1168_v42 = vpop.f32.mrb[62].mxu0  ;;  %v1424_v43 = vpop.f32.mrb[62].mxu1 }
 0x1a1   : > { %v1170_v44 = vpop.f32.mrb[63].mxu0  ;;  %v1426_v45 = vpop.f32.mrb[63].mxu1  ;;  %v1650_v47 = vsel %vm1556_vm0, %v1168_v42, -inf  ;;  %v1842_v51 = vsel %vm1556_vm0, %v1424_v43, -inf }
 0x1a4   : > { %1840 = vmax.xlane.f32.xlu0 %v1839_v46  ;;  %1651 = vmax.xlane.f32.xlu1 %v1650_v47  ;;  %v2007_v46 = vld [vmem:[%s4345_s2 + $0x210] sm:$0xff]  ;;  %v1944_v47 = vld [vmem:[%s4345_s2 + $0x18] sm:$0xff] }
 0x1a6   : > { %v1173_v48 = vpop.f32.mrb[64].mxu0  ;;  %v1429_v49 = vpop.f32.mrb[64].mxu1 }
 0x1a7   : > { %v1175_v50 = vpop.f32.mrb[65].mxu0  ;;  %v1653_v52 = vsel %vm1556_vm0, %v1173_v48, -inf  ;;  %v1431_v53 = vpop.f32.mrb[65].mxu1  ;;  %v1845_v58 = vsel %vm1556_vm0, %v1429_v49, -inf }
 0x1a8   : > { %1843 = vmax.xlane.f32.xlu1 %v1842_v51  ;;  %1654 = vmax.xlane.f32.xlu0 %v1653_v52  ;;  %v1176_v54 = vpop.f32.mrb[66].mxu0  ;;  %v1432_v55 = vpop.f32.mrb[66].mxu1 }
 0x1a9   : > { %v1178_v56 = vpop.f32.mrb[67].mxu0  ;;  %v1434_v57 = vpop.f32.mrb[67].mxu1  ;;  %v1656_v59 = vsel %vm1556_vm0, %v1176_v54, -inf  ;;  %v1848_v63 = vsel %vm1556_vm0, %v1432_v55, -inf }
 0x1ac   : > { %1846 = vmax.xlane.f32.xlu0 %v1845_v58  ;;  %1657 = vmax.xlane.f32.xlu1 %v1656_v59 }
 0x1ae   : > { %v1181_v60 = vpop.f32.mrb[68].mxu0  ;;  %v1437_v61 = vpop.f32.mrb[68].mxu1 }
 0x1af   : > { %v1183_v62 = vpop.f32.mrb[69].mxu0  ;;  %v1659_v0 = vsel %vm1556_vm0, %v1181_v60, -inf  ;;  %v1439_v1 = vpop.f32.mrb[69].mxu1  ;;  %v1851_v6 = vsel %vm1556_vm0, %v1437_v61, -inf }
 0x1b0   : > { %1849 = vmax.xlane.f32.xlu1 %v1848_v63  ;;  %1660 = vmax.xlane.f32.xlu0 %v1659_v0  ;;  %v1184_v2 = vpop.f32.mrb[70].mxu0  ;;  %v1440_v3 = vpop.f32.mrb[70].mxu1  ;;  %v2008_v63 = vld [vmem:[%s4345_s2 + $0x218] sm:$0xff]  ;;  %v1945_v0 = vld [vmem:[%s4345_s2 + $0x20] sm:$0xff] }
 0x1b1   : > { %v1186_v4 = vpop.f32.mrb[71].mxu0  ;;  %v1442_v5 = vpop.f32.mrb[71].mxu1  ;;  %v1662_v7 = vsel %vm1556_vm0, %v1184_v2, -inf  ;;  %v1854_v16 = vsel %vm1556_vm0, %v1440_v3, -inf }
 0x1b4   : > { %1852 = vmax.xlane.f32.xlu0 %v1851_v6  ;;  %1663 = vmax.xlane.f32.xlu1 %v1662_v7 }
 0x1b5   : > { %v1559_v9 = vpop.xlane.xlu0 %1558 }
 0x1b6   : > { %v2069_v11 = vadd.f32 %v1941_v8, %v1559_v9  ;;  %v1189_v12 = vpop.f32.mrb[72].mxu0  ;;  %v1445_v13 = vpop.f32.mrb[72].mxu1 }
 0x1b7   : > { %v1754_v14 = vpop.xlane.xlu1 %1753  ;;  %v1191_v15 = vpop.f32.mrb[73].mxu0  ;;  %v1665_v17 = vsel %vm1556_vm0, %v1189_v12, -inf  ;;  %v1857_v25 = vsel %vm1556_vm0, %v1445_v13, -inf }
 0x1b8   : > { %v2197_v19 = vmul.f32 0.2, %v2069_v11  ;;  %v2134_v20 = vadd.f32 %v2006_v10, %v1754_v14  ;;  %1855 = vmax.xlane.f32.xlu1 %v1854_v16  ;;  %1666 = vmax.xlane.f32.xlu0 %v1665_v17  ;;  %v1192_v21 = vpop.f32.mrb[74].mxu0  ;;  %v1447_v22 = vpop.f32.mrb[73].mxu1  ;;  %v2009_v14 = vld [vmem:[%s4345_s2 + $0x220] sm:$0xff]  ;;  %v1946_v15 = vld [vmem:[%s4345_s2 + $0x28] sm:$0xff] }
 0x1b9   : > { %v1751_v23 = vpop.xlane.xlu0 %1750  ;;  %v1194_v24 = vpop.f32.mrb[75].mxu0  ;;  %v1668_v31 = vsel %vm1556_vm0, %v1192_v21, -inf }
 0x1ba   : > { %v2325_v26 = vmax.f32 %v2069_v11, %v2197_v19  ;;  %v2262_v27 = vmul.f32 0.2, %v2134_v20  ;;  %v2133_v28 = vadd.f32 %v2005_v18, %v1751_v23  ;;  %v1448_v29 = vpop.f32.mrb[74].mxu1 }
 0x1bb   : > { %v1450_v30 = vpop.f32.mrb[75].mxu1  ;;  %v1860_v44 = vsel %vm1556_vm0, %v1448_v29, -inf }
 0x1bc   : > { %2454 = vst.msk [vmem:[%s3646_s4] sm:$0xff] %vm2453_vm1, %v2325_v26  ;;  %v2390_v34 = vmax.f32 %v2134_v20, %v2262_v27  ;;  %v2261_v35 = vmul.f32 0.2, %v2133_v28  ;;  %1858 = vmax.xlane.f32.xlu0 %v1857_v25  ;;  %1669 = vmax.xlane.f32.xlu1 %v1668_v31  ;;  %v2010_v31 = vld [vmem:[%s4345_s2 + $0x228] sm:$0xff] }
 0x1bd   : > { %v1562_v36 = vpop.xlane.xlu0 %1561  ;;  %v1565_v37 = vpop.xlane.xlu1 %1564 }
 0x1be   : > { %2519 = vst.msk [vmem:[%s3646_s4 + $0x208] sm:$0xff] %vm2453_vm1, %v2390_v34  ;;  %v2389_v38 = vmax.f32 %v2133_v28, %v2261_v35  ;;  %v2070_v39 = vadd.f32 %v1942_v32, %v1562_v36  ;;  %v2071_v40 = vadd.f32 %v1943_v33, %v1565_v37  ;;  %v1197_v41 = vpop.f32.mrb[76].mxu0  ;;  %v1453_v42 = vpop.f32.mrb[76].mxu1  ;;  %v1947_v32 = vld [vmem:[%s4345_s2 + $0x30] sm:$0xff] }
 0x1bf   : > { %v1199_v43 = vpop.f32.mrb[77].mxu0  ;;  %v1671_v45 = vsel %vm1556_vm0, %v1197_v41, -inf  ;;  %v1455_v48 = vpop.f32.mrb[77].mxu1  ;;  %v1863_v55 = vsel %vm1556_vm0, %v1453_v42, -inf }
 0x1c0   : > { %2518 = vst.msk [vmem:[%s3646_s4 + $0x200] sm:$0xff] %vm2453_vm1, %v2389_v38  ;;  %v2198_v49 = vmul.f32 0.2, %v2070_v39  ;;  %v2199_v50 = vmul.f32 0.2, %v2071_v40  ;;  %1861 = vmax.xlane.f32.xlu1 %v1860_v44  ;;  %1672 = vmax.xlane.f32.xlu0 %v1671_v45  ;;  %v1200_v51 = vpop.f32.mrb[78].mxu0 }
 0x1c1   : > { %v1456_v52 = vpop.f32.mrb[78].mxu1  ;;  %v1757_v53 = vpop.xlane.xlu0 %1756  ;;  %v1674_v62 = vsel %vm1556_vm0, %v1200_v51, -inf }
 0x1c2   : > { %v1568_v54 = vpop.xlane.xlu1 %1567  ;;  %v2326_v56 = vmax.f32 %v2070_v39, %v2198_v49  ;;  %v2327_v57 = vmax.f32 %v2071_v40, %v2199_v50  ;;  %v2135_v58 = vadd.f32 %v2007_v46, %v1757_v53  ;;  %v1202_v60 = vpop.f32.mrb[79].mxu0  ;;  %v1866_v12 = vsel %vm1556_vm0, %v1456_v52, -inf  ;;  %v2011_v46 = vld [vmem:[%s4345_s2 + $0x230] sm:$0xff] }
 0x1c3   : > { %v2072_v59 = vadd.f32 %v1944_v47, %v1568_v54  ;;  %v1458_v61 = vpop.f32.mrb[79].mxu1  ;;  %v1948_v47 = vld [vmem:[%s4345_s2 + $0x38] sm:$0xff] }
 0x1c4   : > { %2455 = vst.msk [vmem:[%s3646_s4 + $0x8] sm:$0xff] %vm2453_vm1, %v2326_v56  ;;  %2456 = vst.msk [vmem:[%s3646_s4 + $0x10] sm:$0xff] %vm2453_vm1, %v2327_v57  ;;  %v2263_v1 = vmul.f32 0.2, %v2135_v58  ;;  %1864 = vmax.xlane.f32.xlu0 %v1863_v55  ;;  %1675 = vmax.xlane.f32.xlu1 %v1674_v62 }
 0x1c5   : > { %v2200_v2 = vmul.f32 0.2, %v2072_v59  ;;  %v1571_v4 = vpop.xlane.xlu0 %1570 }
 0x1c6   : > { %v1760_v3 = vpop.xlane.xlu1 %1759  ;;  %v2391_v5 = vmax.f32 %v2135_v58, %v2263_v1  ;;  %v2073_v8 = vadd.f32 %v1945_v0, %v1571_v4  ;;  %v1205_v9 = vpop.f32.mrb[80].mxu0  ;;  %v1949_v0 = vld [vmem:[%s4345_s2 + $0x40] sm:$0xff] }
 0x1c7   : > { %v2328_v6 = vmax.f32 %v2072_v59, %v2200_v2  ;;  %v2136_v7 = vadd.f32 %v2008_v63, %v1760_v3  ;;  %v1461_v10 = vpop.f32.mrb[80].mxu1  ;;  %v1207_v11 = vpop.f32.mrb[81].mxu0  ;;  %v1677_v13 = vsel %vm1556_vm0, %v1205_v9, -inf  ;;  %v2012_v63 = vld [vmem:[%s4345_s2 + $0x238] sm:$0xff] }
 0x1c8   : > { %v1463_v16 = vpop.f32.mrb[81].mxu1  ;;  %2520 = vst.msk [vmem:[%s3646_s4 + $0x210] sm:$0xff] %vm2453_vm1, %v2391_v5  ;;  %v2201_v18 = vmul.f32 0.2, %v2073_v8  ;;  %1867 = vmax.xlane.f32.xlu1 %v1866_v12  ;;  %1678 = vmax.xlane.f32.xlu0 %v1677_v13  ;;  %v1208_v19 = vpop.f32.mrb[82].mxu0  ;;  %v1869_v23 = vsel %vm1556_vm0, %v1461_v10, -inf }
 0x1c9   : > { %2457 = vst.msk [vmem:[%s3646_s4 + $0x18] sm:$0xff] %vm2453_vm1, %v2328_v6  ;;  %v2264_v17 = vmul.f32 0.2, %v2136_v7  ;;  %v1464_v20 = vpop.f32.mrb[82].mxu1  ;;  %v1763_v21 = vpop.xlane.xlu0 %1762  ;;  %v1680_v30 = vsel %vm1556_vm0, %v1208_v19, -inf }
 0x1ca   : > { %v1574_v22 = vpop.xlane.xlu1 %1573  ;;  %v2329_v25 = vmax.f32 %v2073_v8, %v2201_v18  ;;  %v2137_v26 = vadd.f32 %v2009_v14, %v1763_v21  ;;  %v1210_v28 = vpop.f32.mrb[83].mxu0  ;;  %v1872_v44 = vsel %vm1556_vm0, %v1464_v20, -inf  ;;  %v2013_v14 = vld [vmem:[%s4345_s2 + $0x240] sm:$0xff] }
 0x1cb   : > { %v2392_v24 = vmax.f32 %v2136_v7, %v2264_v17  ;;  %v2074_v27 = vadd.f32 %v1946_v15, %v1574_v22  ;;  %v1466_v29 = vpop.f32.mrb[83].mxu1  ;;  %v1950_v15 = vld [vmem:[%s4345_s2 + $0x48] sm:$0xff] }
 0x1cc   : > { %2458 = vst.msk [vmem:[%s3646_s4 + $0x20] sm:$0xff] %vm2453_vm1, %v2329_v25  ;;  %v2265_v33 = vmul.f32 0.2, %v2137_v26  ;;  %1870 = vmax.xlane.f32.xlu0 %v1869_v23  ;;  %1681 = vmax.xlane.f32.xlu1 %v1680_v30 }
 0x1cd   : > { %2521 = vst.msk [vmem:[%s3646_s4 + $0x218] sm:$0xff] %vm2453_vm1, %v2392_v24  ;;  %v2202_v34 = vmul.f32 0.2, %v2074_v27  ;;  %v1577_v36 = vpop.xlane.xlu0 %1576 }
 0x1ce   : > { %v1766_v35 = vpop.xlane.xlu1 %1765  ;;  %v2393_v37 = vmax.f32 %v2137_v26, %v2265_v33  ;;  %v2075_v40 = vadd.f32 %v1947_v32, %v1577_v36  ;;  %v1213_v41 = vpop.f32.mrb[84].mxu0  ;;  %v1951_v32 = vld [vmem:[%s4345_s2 + $0x50] sm:$0xff] }
 0x1cf   : > { %v2330_v38 = vmax.f32 %v2074_v27, %v2202_v34  ;;  %v2138_v39 = vadd.f32 %v2010_v31, %v1766_v35  ;;  %v1469_v42 = vpop.f32.mrb[84].mxu1  ;;  %v1215_v43 = vpop.f32.mrb[85].mxu0  ;;  %v1683_v45 = vsel %vm1556_vm0, %v1213_v41, -inf  ;;  %v2014_v31 = vld [vmem:[%s4345_s2 + $0x248] sm:$0xff] }
 0x1d0   : > { %v1471_v48 = vpop.f32.mrb[85].mxu1  ;;  %2522 = vst.msk [vmem:[%s3646_s4 + $0x220] sm:$0xff] %vm2453_vm1, %v2393_v37  ;;  %v2203_v50 = vmul.f32 0.2, %v2075_v40  ;;  %1873 = vmax.xlane.f32.xlu1 %v1872_v44  ;;  %1684 = vmax.xlane.f32.xlu0 %v1683_v45  ;;  %v1216_v51 = vpop.f32.mrb[86].mxu0  ;;  %v1875_v55 = vsel %vm1556_vm0, %v1469_v42, -inf }
 0x1d1   : > { %2459 = vst.msk [vmem:[%s3646_s4 + $0x28] sm:$0xff] %vm2453_vm1, %v2330_v38  ;;  %v2266_v49 = vmul.f32 0.2, %v2138_v39  ;;  %v1472_v52 = vpop.f32.mrb[86].mxu1  ;;  %v1769_v53 = vpop.xlane.xlu0 %1768  ;;  %v1686_v62 = vsel %vm1556_vm0, %v1216_v51, -inf }
 0x1d2   : > { %v1580_v54 = vpop.xlane.xlu1 %1579  ;;  %v2331_v57 = vmax.f32 %v2075_v40, %v2203_v50  ;;  %v2139_v58 = vadd.f32 %v2011_v46, %v1769_v53  ;;  %v1218_v60 = vpop.f32.mrb[87].mxu0  ;;  %v1878_v12 = vsel %vm1556_vm0, %v1472_v52, -inf  ;;  %v2015_v46 = vld [vmem:[%s4345_s2 + $0x250] sm:$0xff] }
 0x1d3   : > { %v2394_v56 = vmax.f32 %v2138_v39, %v2266_v49  ;;  %v2076_v59 = vadd.f32 %v1948_v47, %v1580_v54  ;;  %v1474_v61 = vpop.f32.mrb[87].mxu1  ;;  %v1952_v47 = vld [vmem:[%s4345_s2 + $0x58] sm:$0xff] }
 0x1d4   : > { %2460 = vst.msk [vmem:[%s3646_s4 + $0x30] sm:$0xff] %vm2453_vm1, %v2331_v57  ;;  %v2267_v1 = vmul.f32 0.2, %v2139_v58  ;;  %1876 = vmax.xlane.f32.xlu0 %v1875_v55  ;;  %1687 = vmax.xlane.f32.xlu1 %v1686_v62 }
 0x1d5   : > { %2523 = vst.msk [vmem:[%s3646_s4 + $0x228] sm:$0xff] %vm2453_vm1, %v2394_v56  ;;  %v2204_v2 = vmul.f32 0.2, %v2076_v59  ;;  %v1583_v4 = vpop.xlane.xlu0 %1582 }
 0x1d6   : > { %v1772_v3 = vpop.xlane.xlu1 %1771  ;;  %v2395_v5 = vmax.f32 %v2139_v58, %v2267_v1  ;;  %v2077_v8 = vadd.f32 %v1949_v0, %v1583_v4  ;;  %v1221_v9 = vpop.f32.mrb[88].mxu0  ;;  %v1953_v0 = vld [vmem:[%s4345_s2 + $0x60] sm:$0xff] }
 0x1d7   : > { %v2332_v6 = vmax.f32 %v2076_v59, %v2204_v2  ;;  %v2140_v7 = vadd.f32 %v2012_v63, %v1772_v3  ;;  %v1477_v10 = vpop.f32.mrb[88].mxu1  ;;  %v1223_v11 = vpop.f32.mrb[89].mxu0  ;;  %v1689_v13 = vsel %vm1556_vm0, %v1221_v9, -inf  ;;  %v2016_v63 = vld [vmem:[%s4345_s2 + $0x258] sm:$0xff] }
 0x1d8   : > { %v1479_v16 = vpop.f32.mrb[89].mxu1  ;;  %2524 = vst.msk [vmem:[%s3646_s4 + $0x230] sm:$0xff] %vm2453_vm1, %v2395_v5  ;;  %v2205_v18 = vmul.f32 0.2, %v2077_v8  ;;  %1879 = vmax.xlane.f32.xlu1 %v1878_v12  ;;  %1690 = vmax.xlane.f32.xlu0 %v1689_v13  ;;  %v1224_v19 = vpop.f32.mrb[90].mxu0  ;;  %v1881_v23 = vsel %vm1556_vm0, %v1477_v10, -inf }
 0x1d9   : > { %2461 = vst.msk [vmem:[%s3646_s4 + $0x38] sm:$0xff] %vm2453_vm1, %v2332_v6  ;;  %v2268_v17 = vmul.f32 0.2, %v2140_v7  ;;  %v1480_v20 = vpop.f32.mrb[90].mxu1  ;;  %v1775_v21 = vpop.xlane.xlu0 %1774  ;;  %v1692_v30 = vsel %vm1556_vm0, %v1224_v19, -inf }
 0x1da   : > { %v1586_v22 = vpop.xlane.xlu1 %1585  ;;  %v2333_v25 = vmax.f32 %v2077_v8, %v2205_v18  ;;  %v2141_v26 = vadd.f32 %v2013_v14, %v1775_v21  ;;  %v1226_v28 = vpop.f32.mrb[91].mxu0  ;;  %v1884_v44 = vsel %vm1556_vm0, %v1480_v20, -inf  ;;  %v2017_v14 = vld [vmem:[%s4345_s2 + $0x260] sm:$0xff] }
 0x1db   : > { %v2396_v24 = vmax.f32 %v2140_v7, %v2268_v17  ;;  %v2078_v27 = vadd.f32 %v1950_v15, %v1586_v22  ;;  %v1482_v29 = vpop.f32.mrb[91].mxu1  ;;  %v1954_v15 = vld [vmem:[%s4345_s2 + $0x68] sm:$0xff] }
 0x1dc   : > { %2462 = vst.msk [vmem:[%s3646_s4 + $0x40] sm:$0xff] %vm2453_vm1, %v2333_v25  ;;  %v2269_v33 = vmul.f32 0.2, %v2141_v26  ;;  %1882 = vmax.xlane.f32.xlu0 %v1881_v23  ;;  %1693 = vmax.xlane.f32.xlu1 %v1692_v30 }
 0x1dd   : > { %2525 = vst.msk [vmem:[%s3646_s4 + $0x238] sm:$0xff] %vm2453_vm1, %v2396_v24  ;;  %v2206_v34 = vmul.f32 0.2, %v2078_v27  ;;  %v1589_v36 = vpop.xlane.xlu0 %1588 }
 0x1de   : > { %v1778_v35 = vpop.xlane.xlu1 %1777  ;;  %v2397_v37 = vmax.f32 %v2141_v26, %v2269_v33  ;;  %v2079_v40 = vadd.f32 %v1951_v32, %v1589_v36  ;;  %v1229_v41 = vpop.f32.mrb[92].mxu0  ;;  %v1955_v32 = vld [vmem:[%s4345_s2 + $0x70] sm:$0xff] }
 0x1df   : > { %v2334_v38 = vmax.f32 %v2078_v27, %v2206_v34  ;;  %v2142_v39 = vadd.f32 %v2014_v31, %v1778_v35  ;;  %v1485_v42 = vpop.f32.mrb[92].mxu1  ;;  %v1231_v43 = vpop.f32.mrb[93].mxu0  ;;  %v1695_v45 = vsel %vm1556_vm0, %v1229_v41, -inf  ;;  %v2018_v31 = vld [vmem:[%s4345_s2 + $0x268] sm:$0xff] }
 0x1e0   : > { %v1487_v48 = vpop.f32.mrb[93].mxu1  ;;  %2526 = vst.msk [vmem:[%s3646_s4 + $0x240] sm:$0xff] %vm2453_vm1, %v2397_v37  ;;  %v2207_v50 = vmul.f32 0.2, %v2079_v40  ;;  %1885 = vmax.xlane.f32.xlu1 %v1884_v44  ;;  %1696 = vmax.xlane.f32.xlu0 %v1695_v45  ;;  %v1232_v51 = vpop.f32.mrb[94].mxu0  ;;  %v1887_v55 = vsel %vm1556_vm0, %v1485_v42, -inf }
 0x1e1   : > { %2463 = vst.msk [vmem:[%s3646_s4 + $0x48] sm:$0xff] %vm2453_vm1, %v2334_v38  ;;  %v2270_v49 = vmul.f32 0.2, %v2142_v39  ;;  %v1488_v52 = vpop.f32.mrb[94].mxu1  ;;  %v1781_v53 = vpop.xlane.xlu0 %1780  ;;  %v1698_v62 = vsel %vm1556_vm0, %v1232_v51, -inf }
 0x1e2   : > { %v1592_v54 = vpop.xlane.xlu1 %1591  ;;  %v2335_v57 = vmax.f32 %v2079_v40, %v2207_v50  ;;  %v2143_v58 = vadd.f32 %v2015_v46, %v1781_v53  ;;  %v1234_v60 = vpop.f32.mrb[95].mxu0  ;;  %v1890_v12 = vsel %vm1556_vm0, %v1488_v52, -inf  ;;  %v2019_v46 = vld [vmem:[%s4345_s2 + $0x270] sm:$0xff] }
 0x1e3   : > { %v2398_v56 = vmax.f32 %v2142_v39, %v2270_v49  ;;  %v2080_v59 = vadd.f32 %v1952_v47, %v1592_v54  ;;  %v1490_v61 = vpop.f32.mrb[95].mxu1  ;;  %v1956_v47 = vld [vmem:[%s4345_s2 + $0x78] sm:$0xff] }
 0x1e4   : > { %2464 = vst.msk [vmem:[%s3646_s4 + $0x50] sm:$0xff] %vm2453_vm1, %v2335_v57  ;;  %v2271_v1 = vmul.f32 0.2, %v2143_v58  ;;  %1888 = vmax.xlane.f32.xlu0 %v1887_v55  ;;  %1699 = vmax.xlane.f32.xlu1 %v1698_v62 }
 0x1e5   : > { %2527 = vst.msk [vmem:[%s3646_s4 + $0x248] sm:$0xff] %vm2453_vm1, %v2398_v56  ;;  %v2208_v2 = vmul.f32 0.2, %v2080_v59  ;;  %v1595_v4 = vpop.xlane.xlu0 %1594 }
 0x1e6   : > { %v1784_v3 = vpop.xlane.xlu1 %1783  ;;  %v2399_v5 = vmax.f32 %v2143_v58, %v2271_v1  ;;  %v2081_v8 = vadd.f32 %v1953_v0, %v1595_v4  ;;  %v1237_v9 = vpop.f32.mrb[96].mxu0  ;;  %v1957_v0 = vld [vmem:[%s4345_s2 + $0x80] sm:$0xff] }
 0x1e7   : > { %v2336_v6 = vmax.f32 %v2080_v59, %v2208_v2  ;;  %v2144_v7 = vadd.f32 %v2016_v63, %v1784_v3  ;;  %v1493_v10 = vpop.f32.mrb[96].mxu1  ;;  %v1239_v11 = vpop.f32.mrb[97].mxu0  ;;  %v1701_v13 = vsel %vm1556_vm0, %v1237_v9, -inf  ;;  %v2020_v63 = vld [vmem:[%s4345_s2 + $0x278] sm:$0xff] }
 0x1e8   : > { %v1495_v16 = vpop.f32.mrb[97].mxu1  ;;  %2528 = vst.msk [vmem:[%s3646_s4 + $0x250] sm:$0xff] %vm2453_vm1, %v2399_v5  ;;  %v2209_v18 = vmul.f32 0.2, %v2081_v8  ;;  %1891 = vmax.xlane.f32.xlu1 %v1890_v12  ;;  %1702 = vmax.xlane.f32.xlu0 %v1701_v13  ;;  %v1240_v19 = vpop.f32.mrb[98].mxu0  ;;  %v1893_v21 = vsel %vm1556_vm0, %v1493_v10, -inf }
 0x1e9   : > { %2465 = vst.msk [vmem:[%s3646_s4 + $0x58] sm:$0xff] %vm2453_vm1, %v2336_v6  ;;  %v2272_v17 = vmul.f32 0.2, %v2144_v7  ;;  %v1496_v20 = vpop.f32.mrb[98].mxu1  ;;  %v1787_v22 = vpop.xlane.xlu0 %1786  ;;  %v1704_v30 = vsel %vm1556_vm0, %v1240_v19, -inf }
 0x1ea   : > { %v1598_v23 = vpop.xlane.xlu1 %1597  ;;  %v2337_v25 = vmax.f32 %v2081_v8, %v2209_v18  ;;  %v2145_v26 = vadd.f32 %v2017_v14, %v1787_v22  ;;  %v1242_v28 = vpop.f32.mrb[99].mxu0  ;;  %v1896_v43 = vsel %vm1556_vm0, %v1496_v20, -inf  ;;  %v2021_v14 = vld [vmem:[%s4345_s2 + $0x280] sm:$0xff] }
 0x1eb   : > { %v2400_v24 = vmax.f32 %v2144_v7, %v2272_v17  ;;  %v2082_v27 = vadd.f32 %v1954_v15, %v1598_v23  ;;  %v1498_v29 = vpop.f32.mrb[99].mxu1  ;;  %v1958_v15 = vld [vmem:[%s4345_s2 + $0x88] sm:$0xff] }
 0x1ec   : > { %2466 = vst.msk [vmem:[%s3646_s4 + $0x60] sm:$0xff] %vm2453_vm1, %v2337_v25  ;;  %v2273_v33 = vmul.f32 0.2, %v2145_v26  ;;  %1894 = vmax.xlane.f32.xlu0 %v1893_v21  ;;  %1705 = vmax.xlane.f32.xlu1 %v1704_v30 }
 0x1ed   : > { %2529 = vst.msk [vmem:[%s3646_s4 + $0x258] sm:$0xff] %vm2453_vm1, %v2400_v24  ;;  %v2210_v34 = vmul.f32 0.2, %v2082_v27  ;;  %v1601_v36 = vpop.xlane.xlu0 %1600 }
 0x1ee   : > { %v1790_v35 = vpop.xlane.xlu1 %1789  ;;  %v2401_v37 = vmax.f32 %v2145_v26, %v2273_v33  ;;  %v2083_v40 = vadd.f32 %v1955_v32, %v1601_v36  ;;  %v1245_v41 = vpop.f32.mrb[100].mxu0  ;;  %v1959_v32 = vld [vmem:[%s4345_s2 + $0x90] sm:$0xff] }
 0x1ef   : > { %v2338_v38 = vmax.f32 %v2082_v27, %v2210_v34  ;;  %v2146_v39 = vadd.f32 %v2018_v31, %v1790_v35  ;;  %v1501_v42 = vpop.f32.mrb[100].mxu1  ;;  %v1707_v44 = vsel %vm1556_vm0, %v1245_v41, -inf  ;;  %v1247_v45 = vpop.f32.mrb[101].mxu0  ;;  %v2022_v31 = vld [vmem:[%s4345_s2 + $0x288] sm:$0xff] }
 0x1f0   : > { %v1503_v48 = vpop.f32.mrb[101].mxu1  ;;  %2530 = vst.msk [vmem:[%s3646_s4 + $0x260] sm:$0xff] %vm2453_vm1, %v2401_v37  ;;  %v2211_v50 = vmul.f32 0.2, %v2083_v40  ;;  %1897 = vmax.xlane.f32.xlu1 %v1896_v43  ;;  %1708 = vmax.xlane.f32.xlu0 %v1707_v44  ;;  %v1248_v51 = vpop.f32.mrb[102].mxu0  ;;  %v1899_v53 = vsel %vm1556_vm0, %v1501_v42, -inf }
 0x1f1   : > { %2467 = vst.msk [vmem:[%s3646_s4 + $0x68] sm:$0xff] %vm2453_vm1, %v2338_v38  ;;  %v2274_v49 = vmul.f32 0.2, %v2146_v39  ;;  %v1504_v52 = vpop.f32.mrb[102].mxu1  ;;  %v1793_v54 = vpop.xlane.xlu0 %1792  ;;  %v1710_v62 = vsel %vm1556_vm0, %v1248_v51, -inf }
 0x1f2   : > { %v1604_v55 = vpop.xlane.xlu1 %1603  ;;  %v2339_v57 = vmax.f32 %v2083_v40, %v2211_v50  ;;  %v2147_v58 = vadd.f32 %v2019_v46, %v1793_v54  ;;  %v1250_v60 = vpop.f32.mrb[103].mxu0  ;;  %v1902_v11 = vsel %vm1556_vm0, %v1504_v52, -inf  ;;  %v2023_v46 = vld [vmem:[%s4345_s2 + $0x290] sm:$0xff] }
 0x1f3   : > { %v2402_v56 = vmax.f32 %v2146_v39, %v2274_v49  ;;  %v2084_v59 = vadd.f32 %v1956_v47, %v1604_v55  ;;  %v1506_v61 = vpop.f32.mrb[103].mxu1  ;;  %v1960_v47 = vld [vmem:[%s4345_s2 + $0x98] sm:$0xff] }
 0x1f4   : > { %2468 = vst.msk [vmem:[%s3646_s4 + $0x70] sm:$0xff] %vm2453_vm1, %v2339_v57  ;;  %v2275_v1 = vmul.f32 0.2, %v2147_v58  ;;  %1900 = vmax.xlane.f32.xlu0 %v1899_v53  ;;  %1711 = vmax.xlane.f32.xlu1 %v1710_v62 }
 0x1f5   : > { %2531 = vst.msk [vmem:[%s3646_s4 + $0x268] sm:$0xff] %vm2453_vm1, %v2402_v56  ;;  %v2212_v2 = vmul.f32 0.2, %v2084_v59  ;;  %v1607_v4 = vpop.xlane.xlu0 %1606 }
 0x1f6   : > { %v1796_v3 = vpop.xlane.xlu1 %1795  ;;  %v2403_v5 = vmax.f32 %v2147_v58, %v2275_v1  ;;  %v2085_v8 = vadd.f32 %v1957_v0, %v1607_v4  ;;  %v1253_v9 = vpop.f32.mrb[104].mxu0  ;;  %v1961_v0 = vld [vmem:[%s4345_s2 + $0xa0] sm:$0xff] }
 0x1f7   : > { %v2340_v6 = vmax.f32 %v2084_v59, %v2212_v2  ;;  %v2148_v7 = vadd.f32 %v2020_v63, %v1796_v3  ;;  %v1509_v10 = vpop.f32.mrb[104].mxu1  ;;  %v1713_v12 = vsel %vm1556_vm0, %v1253_v9, -inf  ;;  %v1255_v13 = vpop.f32.mrb[105].mxu0  ;;  %v2024_v63 = vld [vmem:[%s4345_s2 + $0x298] sm:$0xff] }
 0x1f8   : > { %v1511_v16 = vpop.f32.mrb[105].mxu1  ;;  %2532 = vst.msk [vmem:[%s3646_s4 + $0x270] sm:$0xff] %vm2453_vm1, %v2403_v5  ;;  %v2213_v18 = vmul.f32 0.2, %v2085_v8  ;;  %1903 = vmax.xlane.f32.xlu1 %v1902_v11  ;;  %1714 = vmax.xlane.f32.xlu0 %v1713_v12  ;;  %v1256_v19 = vpop.f32.mrb[106].mxu0  ;;  %v1905_v21 = vsel %vm1556_vm0, %v1509_v10, -inf }
 0x1f9   : > { %2469 = vst.msk [vmem:[%s3646_s4 + $0x78] sm:$0xff] %vm2453_vm1, %v2340_v6  ;;  %v2276_v17 = vmul.f32 0.2, %v2148_v7  ;;  %v1512_v20 = vpop.f32.mrb[106].mxu1  ;;  %v1799_v22 = vpop.xlane.xlu0 %1798  ;;  %v1716_v30 = vsel %vm1556_vm0, %v1256_v19, -inf }
 0x1fa   : > { %v1610_v23 = vpop.xlane.xlu1 %1609  ;;  %v2341_v25 = vmax.f32 %v2085_v8, %v2213_v18  ;;  %v2149_v26 = vadd.f32 %v2021_v14, %v1799_v22  ;;  %v1258_v28 = vpop.f32.mrb[107].mxu0  ;;  %v1908_v43 = vsel %vm1556_vm0, %v1512_v20, -inf  ;;  %v2025_v14 = vld [vmem:[%s4345_s2 + $0x2a0] sm:$0xff] }
 0x1fb   : > { %v2404_v24 = vmax.f32 %v2148_v7, %v2276_v17  ;;  %v2086_v27 = vadd.f32 %v1958_v15, %v1610_v23  ;;  %v1514_v29 = vpop.f32.mrb[107].mxu1  ;;  %v1962_v15 = vld [vmem:[%s4345_s2 + $0xa8] sm:$0xff] }
 0x1fc   : > { %2470 = vst.msk [vmem:[%s3646_s4 + $0x80] sm:$0xff] %vm2453_vm1, %v2341_v25  ;;  %v2277_v33 = vmul.f32 0.2, %v2149_v26  ;;  %1906 = vmax.xlane.f32.xlu0 %v1905_v21  ;;  %1717 = vmax.xlane.f32.xlu1 %v1716_v30 }
 0x1fd   : > { %2533 = vst.msk [vmem:[%s3646_s4 + $0x278] sm:$0xff] %vm2453_vm1, %v2404_v24  ;;  %v2214_v34 = vmul.f32 0.2, %v2086_v27  ;;  %v1613_v36 = vpop.xlane.xlu0 %1612 }
 0x1fe   : > { %v1802_v35 = vpop.xlane.xlu1 %1801  ;;  %v2405_v37 = vmax.f32 %v2149_v26, %v2277_v33  ;;  %v2087_v40 = vadd.f32 %v1959_v32, %v1613_v36  ;;  %v1261_v41 = vpop.f32.mrb[108].mxu0  ;;  %v1963_v32 = vld [vmem:[%s4345_s2 + $0xb0] sm:$0xff] }
 0x1ff   : > { %v2342_v38 = vmax.f32 %v2086_v27, %v2214_v34  ;;  %v2150_v39 = vadd.f32 %v2022_v31, %v1802_v35  ;;  %v1517_v42 = vpop.f32.mrb[108].mxu1  ;;  %v1719_v44 = vsel %vm1556_vm0, %v1261_v41, -inf  ;;  %v1263_v45 = vpop.f32.mrb[109].mxu0  ;;  %v2026_v31 = vld [vmem:[%s4345_s2 + $0x2a8] sm:$0xff] }
 0x200   : > { %v1519_v48 = vpop.f32.mrb[109].mxu1  ;;  %2534 = vst.msk [vmem:[%s3646_s4 + $0x280] sm:$0xff] %vm2453_vm1, %v2405_v37  ;;  %v2215_v50 = vmul.f32 0.2, %v2087_v40  ;;  %1909 = vmax.xlane.f32.xlu1 %v1908_v43  ;;  %1720 = vmax.xlane.f32.xlu0 %v1719_v44  ;;  %v1264_v51 = vpop.f32.mrb[110].mxu0  ;;  %v1911_v53 = vsel %vm1556_vm0, %v1517_v42, -inf }
 0x201   : > { %2471 = vst.msk [vmem:[%s3646_s4 + $0x88] sm:$0xff] %vm2453_vm1, %v2342_v38  ;;  %v2278_v49 = vmul.f32 0.2, %v2150_v39  ;;  %v1520_v52 = vpop.f32.mrb[110].mxu1  ;;  %v1805_v54 = vpop.xlane.xlu0 %1804  ;;  %v1722_v62 = vsel %vm1556_vm0, %v1264_v51, -inf }
 0x202   : > { %v1616_v55 = vpop.xlane.xlu1 %1615  ;;  %v2343_v57 = vmax.f32 %v2087_v40, %v2215_v50  ;;  %v2151_v58 = vadd.f32 %v2023_v46, %v1805_v54  ;;  %v1266_v60 = vpop.f32.mrb[111].mxu0  ;;  %v1914_v11 = vsel %vm1556_vm0, %v1520_v52, -inf  ;;  %v2027_v46 = vld [vmem:[%s4345_s2 + $0x2b0] sm:$0xff] }
 0x203   : > { %v2406_v56 = vmax.f32 %v2150_v39, %v2278_v49  ;;  %v2088_v59 = vadd.f32 %v1960_v47, %v1616_v55  ;;  %v1522_v61 = vpop.f32.mrb[111].mxu1  ;;  %v1964_v47 = vld [vmem:[%s4345_s2 + $0xb8] sm:$0xff] }
 0x204   : > { %2472 = vst.msk [vmem:[%s3646_s4 + $0x90] sm:$0xff] %vm2453_vm1, %v2343_v57  ;;  %v2279_v1 = vmul.f32 0.2, %v2151_v58  ;;  %1912 = vmax.xlane.f32.xlu0 %v1911_v53  ;;  %1723 = vmax.xlane.f32.xlu1 %v1722_v62 }
 0x205   : > { %2535 = vst.msk [vmem:[%s3646_s4 + $0x288] sm:$0xff] %vm2453_vm1, %v2406_v56  ;;  %v2216_v2 = vmul.f32 0.2, %v2088_v59  ;;  %v1619_v4 = vpop.xlane.xlu0 %1618 }
 0x206   : > { %v1808_v3 = vpop.xlane.xlu1 %1807  ;;  %v2407_v5 = vmax.f32 %v2151_v58, %v2279_v1  ;;  %v2089_v8 = vadd.f32 %v1961_v0, %v1619_v4  ;;  %v1269_v9 = vpop.f32.mrb[112].mxu0  ;;  %v1965_v0 = vld [vmem:[%s4345_s2 + $0xc0] sm:$0xff] }
 0x207   : > { %v2344_v6 = vmax.f32 %v2088_v59, %v2216_v2  ;;  %v2152_v7 = vadd.f32 %v2024_v63, %v1808_v3  ;;  %v1525_v10 = vpop.f32.mrb[112].mxu1  ;;  %v1725_v12 = vsel %vm1556_vm0, %v1269_v9, -inf  ;;  %v1271_v13 = vpop.f32.mrb[113].mxu0  ;;  %v2028_v63 = vld [vmem:[%s4345_s2 + $0x2b8] sm:$0xff] }
 0x208   : > { %v1527_v16 = vpop.f32.mrb[113].mxu1  ;;  %2536 = vst.msk [vmem:[%s3646_s4 + $0x290] sm:$0xff] %vm2453_vm1, %v2407_v5  ;;  %v2217_v18 = vmul.f32 0.2, %v2089_v8  ;;  %1915 = vmax.xlane.f32.xlu1 %v1914_v11  ;;  %1726 = vmax.xlane.f32.xlu0 %v1725_v12  ;;  %v1272_v19 = vpop.f32.mrb[114].mxu0  ;;  %v1917_v21 = vsel %vm1556_vm0, %v1525_v10, -inf }
 0x209   : > { %2473 = vst.msk [vmem:[%s3646_s4 + $0x98] sm:$0xff] %vm2453_vm1, %v2344_v6  ;;  %v2280_v17 = vmul.f32 0.2, %v2152_v7  ;;  %v1528_v20 = vpop.f32.mrb[114].mxu1  ;;  %v1811_v22 = vpop.xlane.xlu0 %1810  ;;  %v1728_v30 = vsel %vm1556_vm0, %v1272_v19, -inf }
 0x20a   : > { %v1622_v23 = vpop.xlane.xlu1 %1621  ;;  %v2345_v25 = vmax.f32 %v2089_v8, %v2217_v18  ;;  %v2153_v26 = vadd.f32 %v2025_v14, %v1811_v22  ;;  %v1274_v28 = vpop.f32.mrb[115].mxu0  ;;  %v1920_v43 = vsel %vm1556_vm0, %v1528_v20, -inf  ;;  %v2029_v14 = vld [vmem:[%s4345_s2 + $0x2c0] sm:$0xff] }
 0x20b   : > { %v2408_v24 = vmax.f32 %v2152_v7, %v2280_v17  ;;  %v2090_v27 = vadd.f32 %v1962_v15, %v1622_v23  ;;  %v1530_v29 = vpop.f32.mrb[115].mxu1  ;;  %v1966_v15 = vld [vmem:[%s4345_s2 + $0xc8] sm:$0xff] }
 0x20c   : > { %2474 = vst.msk [vmem:[%s3646_s4 + $0xa0] sm:$0xff] %vm2453_vm1, %v2345_v25  ;;  %v2281_v33 = vmul.f32 0.2, %v2153_v26  ;;  %1918 = vmax.xlane.f32.xlu0 %v1917_v21  ;;  %1729 = vmax.xlane.f32.xlu1 %v1728_v30 }
 0x20d   : > { %2537 = vst.msk [vmem:[%s3646_s4 + $0x298] sm:$0xff] %vm2453_vm1, %v2408_v24  ;;  %v2218_v34 = vmul.f32 0.2, %v2090_v27  ;;  %v1625_v36 = vpop.xlane.xlu0 %1624 }
 0x20e   : > { %v1814_v35 = vpop.xlane.xlu1 %1813  ;;  %v2409_v37 = vmax.f32 %v2153_v26, %v2281_v33  ;;  %v2091_v40 = vadd.f32 %v1963_v32, %v1625_v36  ;;  %v1277_v41 = vpop.f32.mrb[116].mxu0  ;;  %v1967_v32 = vld [vmem:[%s4345_s2 + $0xd0] sm:$0xff] }
 0x20f   : > { %v2346_v38 = vmax.f32 %v2090_v27, %v2218_v34  ;;  %v2154_v39 = vadd.f32 %v2026_v31, %v1814_v35  ;;  %v1533_v42 = vpop.f32.mrb[116].mxu1  ;;  %v1731_v44 = vsel %vm1556_vm0, %v1277_v41, -inf  ;;  %v1279_v45 = vpop.f32.mrb[117].mxu0  ;;  %v2030_v31 = vld [vmem:[%s4345_s2 + $0x2c8] sm:$0xff] }
 0x210   : > { %v1535_v48 = vpop.f32.mrb[117].mxu1  ;;  %2538 = vst.msk [vmem:[%s3646_s4 + $0x2a0] sm:$0xff] %vm2453_vm1, %v2409_v37  ;;  %v2219_v50 = vmul.f32 0.2, %v2091_v40  ;;  %1921 = vmax.xlane.f32.xlu1 %v1920_v43  ;;  %1732 = vmax.xlane.f32.xlu0 %v1731_v44  ;;  %v1280_v51 = vpop.f32.mrb[118].mxu0  ;;  %v1923_v53 = vsel %vm1556_vm0, %v1533_v42, -inf }
 0x211   : > { %2475 = vst.msk [vmem:[%s3646_s4 + $0xa8] sm:$0xff] %vm2453_vm1, %v2346_v38  ;;  %v2282_v49 = vmul.f32 0.2, %v2154_v39  ;;  %v1536_v52 = vpop.f32.mrb[118].mxu1  ;;  %v1817_v54 = vpop.xlane.xlu0 %1816  ;;  %v1734_v62 = vsel %vm1556_vm0, %v1280_v51, -inf }
 0x212   : > { %v1628_v55 = vpop.xlane.xlu1 %1627  ;;  %v2347_v57 = vmax.f32 %v2091_v40, %v2219_v50  ;;  %v2155_v58 = vadd.f32 %v2027_v46, %v1817_v54  ;;  %v1282_v60 = vpop.f32.mrb[119].mxu0  ;;  %v1926_v11 = vsel %vm1556_vm0, %v1536_v52, -inf  ;;  %v2031_v46 = vld [vmem:[%s4345_s2 + $0x2d0] sm:$0xff] }
 0x213   : > { %v2410_v56 = vmax.f32 %v2154_v39, %v2282_v49  ;;  %v2092_v59 = vadd.f32 %v1964_v47, %v1628_v55  ;;  %v1538_v61 = vpop.f32.mrb[119].mxu1  ;;  %v1968_v47 = vld [vmem:[%s4345_s2 + $0xd8] sm:$0xff] }
 0x214   : > { %2476 = vst.msk [vmem:[%s3646_s4 + $0xb0] sm:$0xff] %vm2453_vm1, %v2347_v57  ;;  %v2283_v1 = vmul.f32 0.2, %v2155_v58  ;;  %1924 = vmax.xlane.f32.xlu0 %v1923_v53  ;;  %1735 = vmax.xlane.f32.xlu1 %v1734_v62 }
 0x215   : > { %2539 = vst.msk [vmem:[%s3646_s4 + $0x2a8] sm:$0xff] %vm2453_vm1, %v2410_v56  ;;  %v2220_v2 = vmul.f32 0.2, %v2092_v59  ;;  %v1631_v4 = vpop.xlane.xlu0 %1630 }
 0x216   : > { %v1820_v3 = vpop.xlane.xlu1 %1819  ;;  %v2411_v5 = vmax.f32 %v2155_v58, %v2283_v1  ;;  %v2093_v8 = vadd.f32 %v1965_v0, %v1631_v4  ;;  %v1285_v9 = vpop.f32.mrb[120].mxu0  ;;  %v1969_v0 = vld [vmem:[%s4345_s2 + $0xe0] sm:$0xff] }
 0x217   : > { %v2348_v6 = vmax.f32 %v2092_v59, %v2220_v2  ;;  %v2156_v7 = vadd.f32 %v2028_v63, %v1820_v3  ;;  %v1541_v10 = vpop.f32.mrb[120].mxu1  ;;  %v1737_v12 = vsel %vm1556_vm0, %v1285_v9, -inf  ;;  %v1287_v13 = vpop.f32.mrb[121].mxu0  ;;  %v2032_v63 = vld [vmem:[%s4345_s2 + $0x2d8] sm:$0xff] }
 0x218   : > { %v1543_v16 = vpop.f32.mrb[121].mxu1  ;;  %2540 = vst.msk [vmem:[%s3646_s4 + $0x2b0] sm:$0xff] %vm2453_vm1, %v2411_v5  ;;  %v2221_v18 = vmul.f32 0.2, %v2093_v8  ;;  %1927 = vmax.xlane.f32.xlu1 %v1926_v11  ;;  %1738 = vmax.xlane.f32.xlu0 %v1737_v12  ;;  %v1288_v19 = vpop.f32.mrb[122].mxu0  ;;  %v1929_v21 = vsel %vm1556_vm0, %v1541_v10, -inf }
 0x219   : > { %2477 = vst.msk [vmem:[%s3646_s4 + $0xb8] sm:$0xff] %vm2453_vm1, %v2348_v6  ;;  %v2284_v17 = vmul.f32 0.2, %v2156_v7  ;;  %v1544_v20 = vpop.f32.mrb[122].mxu1  ;;  %v1823_v22 = vpop.xlane.xlu0 %1822  ;;  %v1740_v30 = vsel %vm1556_vm0, %v1288_v19, -inf  ;;  %v2033_v10 = vld [vmem:[%s4345_s2 + $0x2e0] sm:$0xff] }
 0x21a   : > { %v1634_v23 = vpop.xlane.xlu1 %1633  ;;  %v2349_v25 = vmax.f32 %v2093_v8, %v2221_v18  ;;  %v2157_v26 = vadd.f32 %v2029_v14, %v1823_v22  ;;  %v1290_v28 = vpop.f32.mrb[123].mxu0  ;;  %v1932_v43 = vsel %vm1556_vm0, %v1544_v20, -inf  ;;  %v1970_v11 = vld [vmem:[%s4345_s2 + $0xe8] sm:$0xff] }
 0x21b   : > { %v2412_v24 = vmax.f32 %v2156_v7, %v2284_v17  ;;  %v2094_v27 = vadd.f32 %v1966_v15, %v1634_v23  ;;  %v1546_v29 = vpop.f32.mrb[123].mxu1  ;;  %v2034_v20 = vld [vmem:[%s4345_s2 + $0x2e8] sm:$0xff] }
 0x21c   : > { %2478 = vst.msk [vmem:[%s3646_s4 + $0xc0] sm:$0xff] %vm2453_vm1, %v2349_v25  ;;  %v2285_v33 = vmul.f32 0.2, %v2157_v26  ;;  %1930 = vmax.xlane.f32.xlu0 %v1929_v21  ;;  %1741 = vmax.xlane.f32.xlu1 %v1740_v30  ;;  %v1971_v21 = vld [vmem:[%s4345_s2 + $0xf0] sm:$0xff] }
 0x21d   : > { %2541 = vst.msk [vmem:[%s3646_s4 + $0x2b8] sm:$0xff] %vm2453_vm1, %v2412_v24  ;;  %v2222_v34 = vmul.f32 0.2, %v2094_v27  ;;  %v1637_v36 = vpop.xlane.xlu0 %1636  ;;  %v2035_v30 = vld [vmem:[%s4345_s2 + $0x2f0] sm:$0xff] }
 0x21e   : > { %v1826_v35 = vpop.xlane.xlu1 %1825  ;;  %v2413_v37 = vmax.f32 %v2157_v26, %v2285_v33  ;;  %v2095_v40 = vadd.f32 %v1967_v32, %v1637_v36  ;;  %v1293_v41 = vpop.f32.mrb[124].mxu0 }
 0x21f   : > { %v2350_v38 = vmax.f32 %v2094_v27, %v2222_v34  ;;  %v2158_v39 = vadd.f32 %v2030_v31, %v1826_v35  ;;  %v1549_v42 = vpop.f32.mrb[124].mxu1  ;;  %v1743_v44 = vsel %vm1556_vm0, %v1293_v41, -inf  ;;  %v1295_v45 = vpop.f32.mrb[125].mxu0  ;;  %v1972_v31 = vld [vmem:[%s4345_s2 + $0xf8] sm:$0xff]  ;;  %v1973_v41 = vld [vmem:[%s4345_s2 + $0x100] sm:$0xff] }
 0x220   : > { %v1551_v48 = vpop.f32.mrb[125].mxu1  ;;  %2542 = vst.msk [vmem:[%s3646_s4 + $0x2c0] sm:$0xff] %vm2453_vm1, %v2413_v37  ;;  %v2223_v50 = vmul.f32 0.2, %v2095_v40  ;;  %1933 = vmax.xlane.f32.xlu1 %v1932_v43  ;;  %1744 = vmax.xlane.f32.xlu0 %v1743_v44  ;;  %v1296_v51 = vpop.f32.mrb[126].mxu0  ;;  %v1935_v53 = vsel %vm1556_vm0, %v1549_v42, -inf }
 0x221   : > { %2479 = vst.msk [vmem:[%s3646_s4 + $0xc8] sm:$0xff] %vm2453_vm1, %v2350_v38  ;;  %v2286_v49 = vmul.f32 0.2, %v2158_v39  ;;  %v1552_v52 = vpop.f32.mrb[126].mxu1  ;;  %v1829_v54 = vpop.xlane.xlu0 %1828  ;;  %v1746_v62 = vsel %vm1556_vm0, %v1296_v51, -inf  ;;  %v1974_v51 = vld [vmem:[%s4345_s2 + $0x108] sm:$0xff] }
 0x222   : > { %v1640_v55 = vpop.xlane.xlu1 %1639  ;;  %v2351_v57 = vmax.f32 %v2095_v40, %v2223_v50  ;;  %v2159_v58 = vadd.f32 %v2031_v46, %v1829_v54  ;;  %v1298_v60 = vpop.f32.mrb[127].mxu0  ;;  %v1938_v9 = vsel %vm1556_vm0, %v1552_v52, -inf  ;;  %v2036_v40 = vld [vmem:[%s4345_s2 + $0x2f8] sm:$0xff]  ;;  %v2037_v50 = vld [vmem:[%s4345_s2 + $0x300] sm:$0xff] }
 0x223   : > { %v2414_v56 = vmax.f32 %v2158_v39, %v2286_v49  ;;  %v2096_v59 = vadd.f32 %v1968_v47, %v1640_v55  ;;  %v1554_v61 = vpop.f32.mrb[127].mxu1  ;;  %v2038_v60 = vld [vmem:[%s4345_s2 + $0x308] sm:$0xff] }
 0x224   : > { %2480 = vst.msk [vmem:[%s3646_s4 + $0xd0] sm:$0xff] %vm2453_vm1, %v2351_v57  ;;  %v2287_v1 = vmul.f32 0.2, %v2159_v58  ;;  %1936 = vmax.xlane.f32.xlu0 %v1935_v53  ;;  %1747 = vmax.xlane.f32.xlu1 %v1746_v62  ;;  %v1975_v61 = vld [vmem:[%s4345_s2 + $0x110] sm:$0xff] }
 0x225   : > { %2543 = vst.msk [vmem:[%s3646_s4 + $0x2c8] sm:$0xff] %vm2453_vm1, %v2414_v56  ;;  %v2224_v2 = vmul.f32 0.2, %v2096_v59  ;;  %v1643_v4 = vpop.xlane.xlu0 %1642 }
 0x226   : > { %v1832_v3 = vpop.xlane.xlu1 %1831  ;;  %v2415_v5 = vmax.f32 %v2159_v58, %v2287_v1  ;;  %v2097_v8 = vadd.f32 %v1969_v0, %v1643_v4 }
 0x227   : > { %v2352_v6 = vmax.f32 %v2096_v59, %v2224_v2  ;;  %v2160_v7 = vadd.f32 %v2032_v63, %v1832_v3 }
 0x228   : > { %2544 = vst.msk [vmem:[%s3646_s4 + $0x2d0] sm:$0xff] %vm2453_vm1, %v2415_v5  ;;  %v2225_v13 = vmul.f32 0.2, %v2097_v8  ;;  %1939 = vmax.xlane.f32.xlu1 %v1938_v9 }
 0x229   : > { %2481 = vst.msk [vmem:[%s3646_s4 + $0xd8] sm:$0xff] %vm2453_vm1, %v2352_v6  ;;  %v2288_v12 = vmul.f32 0.2, %v2160_v7  ;;  %v1835_v14 = vpop.xlane.xlu0 %1834  ;;  %v2039_v6 = vld [vmem:[%s4345_s2 + $0x310] sm:$0xff] }
 0x22a   : > { %v1646_v15 = vpop.xlane.xlu1 %1645  ;;  %v2353_v17 = vmax.f32 %v2097_v8, %v2225_v13  ;;  %v2161_v18 = vadd.f32 %v2033_v10, %v1835_v14 }
 0x22b   : > { %v2416_v16 = vmax.f32 %v2160_v7, %v2288_v12  ;;  %v2098_v19 = vadd.f32 %v1970_v11, %v1646_v15  ;;  %v1976_v7 = vld [vmem:[%s4345_s2 + $0x118] sm:$0xff] }
 0x22c   : > { %2482 = vst.msk [vmem:[%s3646_s4 + $0xe0] sm:$0xff] %vm2453_vm1, %v2353_v17  ;;  %v2289_v22 = vmul.f32 0.2, %v2161_v18  ;;  %v1977_v17 = vld [vmem:[%s4345_s2 + $0x120] sm:$0xff] }
 0x22d   : > { %2545 = vst.msk [vmem:[%s3646_s4 + $0x2d8] sm:$0xff] %vm2453_vm1, %v2416_v16  ;;  %v2226_v23 = vmul.f32 0.2, %v2098_v19  ;;  %v1649_v25 = vpop.xlane.xlu0 %1648  ;;  %v2040_v16 = vld [vmem:[%s4345_s2 + $0x318] sm:$0xff] }
 0x22e   : > { %v1838_v24 = vpop.xlane.xlu1 %1837  ;;  %v2417_v26 = vmax.f32 %v2161_v18, %v2289_v22  ;;  %v2099_v29 = vadd.f32 %v1971_v21, %v1649_v25 }
 0x22f   : > { %v2354_v27 = vmax.f32 %v2098_v19, %v2226_v23  ;;  %v2162_v28 = vadd.f32 %v2034_v20, %v1838_v24 }
 0x230   : > { %2546 = vst.msk [vmem:[%s3646_s4 + $0x2e0] sm:$0xff] %vm2453_vm1, %v2417_v26  ;;  %v2227_v33 = vmul.f32 0.2, %v2099_v29  ;;  %v2041_v26 = vld [vmem:[%s4345_s2 + $0x320] sm:$0xff] }
 0x231   : > { %2483 = vst.msk [vmem:[%s3646_s4 + $0xe8] sm:$0xff] %vm2453_vm1, %v2354_v27  ;;  %v2290_v32 = vmul.f32 0.2, %v2162_v28  ;;  %v1841_v34 = vpop.xlane.xlu0 %1840  ;;  %v1978_v27 = vld [vmem:[%s4345_s2 + $0x128] sm:$0xff] }
 0x232   : > { %v1652_v35 = vpop.xlane.xlu1 %1651  ;;  %v2355_v37 = vmax.f32 %v2099_v29, %v2227_v33  ;;  %v2163_v38 = vadd.f32 %v2035_v30, %v1841_v34 }
 0x233   : > { %v2418_v36 = vmax.f32 %v2162_v28, %v2290_v32  ;;  %v2100_v39 = vadd.f32 %v1972_v31, %v1652_v35 }
 0x234   : > { %2484 = vst.msk [vmem:[%s3646_s4 + $0xf0] sm:$0xff] %vm2453_vm1, %v2355_v37  ;;  %v2291_v42 = vmul.f32 0.2, %v2163_v38  ;;  %v1979_v37 = vld [vmem:[%s4345_s2 + $0x130] sm:$0xff] }
 0x235   : > { %2547 = vst.msk [vmem:[%s3646_s4 + $0x2e8] sm:$0xff] %vm2453_vm1, %v2418_v36  ;;  %v2228_v43 = vmul.f32 0.2, %v2100_v39  ;;  %v1655_v45 = vpop.xlane.xlu0 %1654  ;;  %v2042_v36 = vld [vmem:[%s4345_s2 + $0x328] sm:$0xff] }
 0x236   : > { %v1844_v44 = vpop.xlane.xlu1 %1843  ;;  %v2419_v46 = vmax.f32 %v2163_v38, %v2291_v42  ;;  %v2101_v49 = vadd.f32 %v1973_v41, %v1655_v45 }
 0x237   : > { %v2356_v47 = vmax.f32 %v2100_v39, %v2228_v43  ;;  %v2164_v48 = vadd.f32 %v2036_v40, %v1844_v44 }
 0x238   : > { %2548 = vst.msk [vmem:[%s3646_s4 + $0x2f0] sm:$0xff] %vm2453_vm1, %v2419_v46  ;;  %v2229_v53 = vmul.f32 0.2, %v2101_v49  ;;  %v2043_v46 = vld [vmem:[%s4345_s2 + $0x330] sm:$0xff] }
 0x239   : > { %2485 = vst.msk [vmem:[%s3646_s4 + $0xf8] sm:$0xff] %vm2453_vm1, %v2356_v47  ;;  %v2292_v52 = vmul.f32 0.2, %v2164_v48  ;;  %v1847_v54 = vpop.xlane.xlu0 %1846  ;;  %v1980_v47 = vld [vmem:[%s4345_s2 + $0x138] sm:$0xff] }
 0x23a   : > { %v1658_v55 = vpop.xlane.xlu1 %1657  ;;  %v2357_v57 = vmax.f32 %v2101_v49, %v2229_v53  ;;  %v2165_v58 = vadd.f32 %v2037_v50, %v1847_v54 }
 0x23b   : > { %v2420_v56 = vmax.f32 %v2164_v48, %v2292_v52  ;;  %v2102_v59 = vadd.f32 %v1974_v51, %v1658_v55 }
 0x23c   : > { %2486 = vst.msk [vmem:[%s3646_s4 + $0x100] sm:$0xff] %vm2453_vm1, %v2357_v57  ;;  %v2293_v62 = vmul.f32 0.2, %v2165_v58  ;;  %v1981_v57 = vld [vmem:[%s4345_s2 + $0x140] sm:$0xff] }
 0x23d   : > { %2549 = vst.msk [vmem:[%s3646_s4 + $0x2f8] sm:$0xff] %vm2453_vm1, %v2420_v56  ;;  %v2230_v63 = vmul.f32 0.2, %v2102_v59  ;;  %v1661_v1 = vpop.xlane.xlu0 %1660  ;;  %v2044_v56 = vld [vmem:[%s4345_s2 + $0x338] sm:$0xff] }
 0x23e   : > { %v1850_v0 = vpop.xlane.xlu1 %1849  ;;  %v2421_v2 = vmax.f32 %v2165_v58, %v2293_v62  ;;  %v2103_v5 = vadd.f32 %v1975_v61, %v1661_v1 }
 0x23f   : > { %v2358_v3 = vmax.f32 %v2102_v59, %v2230_v63  ;;  %v2166_v4 = vadd.f32 %v2038_v60, %v1850_v0 }
 0x240   : > { %2550 = vst.msk [vmem:[%s3646_s4 + $0x300] sm:$0xff] %vm2453_vm1, %v2421_v2  ;;  %v2231_v9 = vmul.f32 0.2, %v2103_v5  ;;  %v2045_v2 = vld [vmem:[%s4345_s2 + $0x340] sm:$0xff] }
 0x241   : > { %2487 = vst.msk [vmem:[%s3646_s4 + $0x108] sm:$0xff] %vm2453_vm1, %v2358_v3  ;;  %v2294_v8 = vmul.f32 0.2, %v2166_v4  ;;  %v1853_v10 = vpop.xlane.xlu0 %1852  ;;  %v1982_v3 = vld [vmem:[%s4345_s2 + $0x148] sm:$0xff] }
 0x242   : > { %v1664_v11 = vpop.xlane.xlu1 %1663  ;;  %v2359_v13 = vmax.f32 %v2103_v5, %v2231_v9  ;;  %v2167_v14 = vadd.f32 %v2039_v6, %v1853_v10 }
 0x243   : > { %v2422_v12 = vmax.f32 %v2166_v4, %v2294_v8  ;;  %v2104_v15 = vadd.f32 %v1976_v7, %v1664_v11 }
 0x244   : > { %2488 = vst.msk [vmem:[%s3646_s4 + $0x110] sm:$0xff] %vm2453_vm1, %v2359_v13  ;;  %v2295_v18 = vmul.f32 0.2, %v2167_v14  ;;  %v1983_v13 = vld [vmem:[%s4345_s2 + $0x150] sm:$0xff] }
 0x245   : > { %2551 = vst.msk [vmem:[%s3646_s4 + $0x308] sm:$0xff] %vm2453_vm1, %v2422_v12  ;;  %v2232_v19 = vmul.f32 0.2, %v2104_v15  ;;  %v1667_v21 = vpop.xlane.xlu0 %1666  ;;  %v2046_v12 = vld [vmem:[%s4345_s2 + $0x348] sm:$0xff] }
 0x246   : > { %v1856_v20 = vpop.xlane.xlu1 %1855  ;;  %v2423_v22 = vmax.f32 %v2167_v14, %v2295_v18  ;;  %v2105_v25 = vadd.f32 %v1977_v17, %v1667_v21 }
 0x247   : > { %v2360_v23 = vmax.f32 %v2104_v15, %v2232_v19  ;;  %v2168_v24 = vadd.f32 %v2040_v16, %v1856_v20 }
 0x248   : > { %2552 = vst.msk [vmem:[%s3646_s4 + $0x310] sm:$0xff] %vm2453_vm1, %v2423_v22  ;;  %v2233_v29 = vmul.f32 0.2, %v2105_v25  ;;  %v2047_v22 = vld [vmem:[%s4345_s2 + $0x350] sm:$0xff] }
 0x249   : > { %2489 = vst.msk [vmem:[%s3646_s4 + $0x118] sm:$0xff] %vm2453_vm1, %v2360_v23  ;;  %v2296_v28 = vmul.f32 0.2, %v2168_v24  ;;  %v1859_v30 = vpop.xlane.xlu0 %1858  ;;  %v1984_v23 = vld [vmem:[%s4345_s2 + $0x158] sm:$0xff] }
 0x24a   : > { %v1670_v31 = vpop.xlane.xlu1 %1669  ;;  %v2361_v33 = vmax.f32 %v2105_v25, %v2233_v29  ;;  %v2169_v34 = vadd.f32 %v2041_v26, %v1859_v30 }
 0x24b   : > { %v2424_v32 = vmax.f32 %v2168_v24, %v2296_v28  ;;  %v2106_v35 = vadd.f32 %v1978_v27, %v1670_v31 }
 0x24c   : > { %2490 = vst.msk [vmem:[%s3646_s4 + $0x120] sm:$0xff] %vm2453_vm1, %v2361_v33  ;;  %v2297_v38 = vmul.f32 0.2, %v2169_v34  ;;  %v1985_v33 = vld [vmem:[%s4345_s2 + $0x160] sm:$0xff] }
 0x24d   : > { %2553 = vst.msk [vmem:[%s3646_s4 + $0x318] sm:$0xff] %vm2453_vm1, %v2424_v32  ;;  %v2234_v39 = vmul.f32 0.2, %v2106_v35  ;;  %v1673_v41 = vpop.xlane.xlu0 %1672  ;;  %v2048_v32 = vld [vmem:[%s4345_s2 + $0x358] sm:$0xff] }
 0x24e   : > { %v1862_v40 = vpop.xlane.xlu1 %1861  ;;  %v2425_v42 = vmax.f32 %v2169_v34, %v2297_v38  ;;  %v2107_v45 = vadd.f32 %v1979_v37, %v1673_v41 }
 0x24f   : > { %v2362_v43 = vmax.f32 %v2106_v35, %v2234_v39  ;;  %v2170_v44 = vadd.f32 %v2042_v36, %v1862_v40 }
 0x250   : > { %2554 = vst.msk [vmem:[%s3646_s4 + $0x320] sm:$0xff] %vm2453_vm1, %v2425_v42  ;;  %v2235_v49 = vmul.f32 0.2, %v2107_v45  ;;  %v2049_v42 = vld [vmem:[%s4345_s2 + $0x360] sm:$0xff] }
 0x251   : > { %2491 = vst.msk [vmem:[%s3646_s4 + $0x128] sm:$0xff] %vm2453_vm1, %v2362_v43  ;;  %v2298_v48 = vmul.f32 0.2, %v2170_v44  ;;  %v1865_v50 = vpop.xlane.xlu0 %1864  ;;  %v1986_v43 = vld [vmem:[%s4345_s2 + $0x168] sm:$0xff] }
 0x252   : > { %v1676_v51 = vpop.xlane.xlu1 %1675  ;;  %v2363_v53 = vmax.f32 %v2107_v45, %v2235_v49  ;;  %v2171_v54 = vadd.f32 %v2043_v46, %v1865_v50 }
 0x253   : > { %v2426_v52 = vmax.f32 %v2170_v44, %v2298_v48  ;;  %v2108_v55 = vadd.f32 %v1980_v47, %v1676_v51 }
 0x254   : > { %2492 = vst.msk [vmem:[%s3646_s4 + $0x130] sm:$0xff] %vm2453_vm1, %v2363_v53  ;;  %v2299_v58 = vmul.f32 0.2, %v2171_v54  ;;  %v1987_v53 = vld [vmem:[%s4345_s2 + $0x170] sm:$0xff] }
 0x255   : > { %2555 = vst.msk [vmem:[%s3646_s4 + $0x328] sm:$0xff] %vm2453_vm1, %v2426_v52  ;;  %v2236_v59 = vmul.f32 0.2, %v2108_v55  ;;  %v1679_v61 = vpop.xlane.xlu0 %1678  ;;  %v2050_v52 = vld [vmem:[%s4345_s2 + $0x368] sm:$0xff] }
 0x256   : > { %v1868_v60 = vpop.xlane.xlu1 %1867  ;;  %v2427_v62 = vmax.f32 %v2171_v54, %v2299_v58  ;;  %v2109_v1 = vadd.f32 %v1981_v57, %v1679_v61 }
 0x257   : > { %v2364_v63 = vmax.f32 %v2108_v55, %v2236_v59  ;;  %v2172_v0 = vadd.f32 %v2044_v56, %v1868_v60 }
 0x258   : > { %2556 = vst.msk [vmem:[%s3646_s4 + $0x330] sm:$0xff] %vm2453_vm1, %v2427_v62  ;;  %v2237_v5 = vmul.f32 0.2, %v2109_v1  ;;  %v2051_v62 = vld [vmem:[%s4345_s2 + $0x370] sm:$0xff] }
 0x259   : > { %2493 = vst.msk [vmem:[%s3646_s4 + $0x138] sm:$0xff] %vm2453_vm1, %v2364_v63  ;;  %v2300_v4 = vmul.f32 0.2, %v2172_v0  ;;  %v1871_v6 = vpop.xlane.xlu0 %1870  ;;  %v1988_v63 = vld [vmem:[%s4345_s2 + $0x178] sm:$0xff] }
 0x25a   : > { %v1682_v7 = vpop.xlane.xlu1 %1681  ;;  %v2365_v9 = vmax.f32 %v2109_v1, %v2237_v5  ;;  %v2173_v10 = vadd.f32 %v2045_v2, %v1871_v6 }
 0x25b   : > { %v2428_v8 = vmax.f32 %v2172_v0, %v2300_v4  ;;  %v2110_v11 = vadd.f32 %v1982_v3, %v1682_v7 }
 0x25c   : > { %2494 = vst.msk [vmem:[%s3646_s4 + $0x140] sm:$0xff] %vm2453_vm1, %v2365_v9  ;;  %v2301_v14 = vmul.f32 0.2, %v2173_v10  ;;  %v1989_v9 = vld [vmem:[%s4345_s2 + $0x180] sm:$0xff] }
 0x25d   : > { %2557 = vst.msk [vmem:[%s3646_s4 + $0x338] sm:$0xff] %vm2453_vm1, %v2428_v8  ;;  %v2238_v15 = vmul.f32 0.2, %v2110_v11  ;;  %v1685_v17 = vpop.xlane.xlu0 %1684  ;;  %v2052_v8 = vld [vmem:[%s4345_s2 + $0x378] sm:$0xff] }
 0x25e   : > { %v1874_v16 = vpop.xlane.xlu1 %1873  ;;  %v2429_v18 = vmax.f32 %v2173_v10, %v2301_v14  ;;  %v2111_v21 = vadd.f32 %v1983_v13, %v1685_v17 }
 0x25f   : > { %v2366_v19 = vmax.f32 %v2110_v11, %v2238_v15  ;;  %v2174_v20 = vadd.f32 %v2046_v12, %v1874_v16 }
 0x260   : > { %2558 = vst.msk [vmem:[%s3646_s4 + $0x340] sm:$0xff] %vm2453_vm1, %v2429_v18  ;;  %v2239_v25 = vmul.f32 0.2, %v2111_v21  ;;  %v2053_v18 = vld [vmem:[%s4345_s2 + $0x380] sm:$0xff] }
 0x261   : > { %2495 = vst.msk [vmem:[%s3646_s4 + $0x148] sm:$0xff] %vm2453_vm1, %v2366_v19  ;;  %v2302_v24 = vmul.f32 0.2, %v2174_v20  ;;  %v1877_v26 = vpop.xlane.xlu0 %1876  ;;  %v1990_v19 = vld [vmem:[%s4345_s2 + $0x188] sm:$0xff] }
 0x262   : > { %v1688_v27 = vpop.xlane.xlu1 %1687  ;;  %v2367_v29 = vmax.f32 %v2111_v21, %v2239_v25  ;;  %v2175_v30 = vadd.f32 %v2047_v22, %v1877_v26 }
 0x263   : > { %v2430_v28 = vmax.f32 %v2174_v20, %v2302_v24  ;;  %v2112_v31 = vadd.f32 %v1984_v23, %v1688_v27 }
 0x264   : > { %2496 = vst.msk [vmem:[%s3646_s4 + $0x150] sm:$0xff] %vm2453_vm1, %v2367_v29  ;;  %v2303_v34 = vmul.f32 0.2, %v2175_v30  ;;  %v1991_v29 = vld [vmem:[%s4345_s2 + $0x190] sm:$0xff] }
 0x265   : > { %2559 = vst.msk [vmem:[%s3646_s4 + $0x348] sm:$0xff] %vm2453_vm1, %v2430_v28  ;;  %v2240_v35 = vmul.f32 0.2, %v2112_v31  ;;  %v1691_v37 = vpop.xlane.xlu0 %1690  ;;  %v2054_v28 = vld [vmem:[%s4345_s2 + $0x388] sm:$0xff] }
 0x266   : > { %v1880_v36 = vpop.xlane.xlu1 %1879  ;;  %v2431_v38 = vmax.f32 %v2175_v30, %v2303_v34  ;;  %v2113_v41 = vadd.f32 %v1985_v33, %v1691_v37 }
 0x267   : > { %v2368_v39 = vmax.f32 %v2112_v31, %v2240_v35  ;;  %v2176_v40 = vadd.f32 %v2048_v32, %v1880_v36 }
 0x268   : > { %2560 = vst.msk [vmem:[%s3646_s4 + $0x350] sm:$0xff] %vm2453_vm1, %v2431_v38  ;;  %v2241_v45 = vmul.f32 0.2, %v2113_v41  ;;  %v2055_v38 = vld [vmem:[%s4345_s2 + $0x390] sm:$0xff] }
 0x269   : > { %2497 = vst.msk [vmem:[%s3646_s4 + $0x158] sm:$0xff] %vm2453_vm1, %v2368_v39  ;;  %v2304_v44 = vmul.f32 0.2, %v2176_v40  ;;  %v1883_v46 = vpop.xlane.xlu0 %1882  ;;  %v1992_v39 = vld [vmem:[%s4345_s2 + $0x198] sm:$0xff] }
 0x26a   : > { %v1694_v47 = vpop.xlane.xlu1 %1693  ;;  %v2369_v49 = vmax.f32 %v2113_v41, %v2241_v45  ;;  %v2177_v50 = vadd.f32 %v2049_v42, %v1883_v46 }
 0x26b   : > { %v2432_v48 = vmax.f32 %v2176_v40, %v2304_v44  ;;  %v2114_v51 = vadd.f32 %v1986_v43, %v1694_v47 }
 0x26c   : > { %2498 = vst.msk [vmem:[%s3646_s4 + $0x160] sm:$0xff] %vm2453_vm1, %v2369_v49  ;;  %v2305_v54 = vmul.f32 0.2, %v2177_v50  ;;  %v1993_v49 = vld [vmem:[%s4345_s2 + $0x1a0] sm:$0xff] }
 0x26d   : > { %2561 = vst.msk [vmem:[%s3646_s4 + $0x358] sm:$0xff] %vm2453_vm1, %v2432_v48  ;;  %v2242_v55 = vmul.f32 0.2, %v2114_v51  ;;  %v1697_v57 = vpop.xlane.xlu0 %1696  ;;  %v2056_v48 = vld [vmem:[%s4345_s2 + $0x398] sm:$0xff] }
 0x26e   : > { %v1886_v56 = vpop.xlane.xlu1 %1885  ;;  %v2433_v58 = vmax.f32 %v2177_v50, %v2305_v54  ;;  %v2115_v61 = vadd.f32 %v1987_v53, %v1697_v57 }
 0x26f   : > { %v2370_v59 = vmax.f32 %v2114_v51, %v2242_v55  ;;  %v2178_v60 = vadd.f32 %v2050_v52, %v1886_v56 }
 0x270   : > { %2562 = vst.msk [vmem:[%s3646_s4 + $0x360] sm:$0xff] %vm2453_vm1, %v2433_v58  ;;  %v2243_v1 = vmul.f32 0.2, %v2115_v61  ;;  %v2057_v58 = vld [vmem:[%s4345_s2 + $0x3a0] sm:$0xff] }
 0x271   : > { %2499 = vst.msk [vmem:[%s3646_s4 + $0x168] sm:$0xff] %vm2453_vm1, %v2370_v59  ;;  %v2306_v0 = vmul.f32 0.2, %v2178_v60  ;;  %v1889_v2 = vpop.xlane.xlu0 %1888  ;;  %v1994_v59 = vld [vmem:[%s4345_s2 + $0x1a8] sm:$0xff] }
 0x272   : > { %v1700_v3 = vpop.xlane.xlu1 %1699  ;;  %v2371_v5 = vmax.f32 %v2115_v61, %v2243_v1  ;;  %v2179_v6 = vadd.f32 %v2051_v62, %v1889_v2 }
 0x273   : > { %v2434_v4 = vmax.f32 %v2178_v60, %v2306_v0  ;;  %v2116_v7 = vadd.f32 %v1988_v63, %v1700_v3 }
 0x274   : > { %2500 = vst.msk [vmem:[%s3646_s4 + $0x170] sm:$0xff] %vm2453_vm1, %v2371_v5  ;;  %v2307_v10 = vmul.f32 0.2, %v2179_v6  ;;  %v1995_v5 = vld [vmem:[%s4345_s2 + $0x1b0] sm:$0xff] }
 0x275   : > { %2563 = vst.msk [vmem:[%s3646_s4 + $0x368] sm:$0xff] %vm2453_vm1, %v2434_v4  ;;  %v2244_v11 = vmul.f32 0.2, %v2116_v7  ;;  %v1703_v13 = vpop.xlane.xlu0 %1702  ;;  %v2058_v4 = vld [vmem:[%s4345_s2 + $0x3a8] sm:$0xff] }
 0x276   : > { %v1892_v12 = vpop.xlane.xlu1 %1891  ;;  %v2435_v14 = vmax.f32 %v2179_v6, %v2307_v10  ;;  %v2117_v17 = vadd.f32 %v1989_v9, %v1703_v13 }
 0x277   : > { %v2372_v15 = vmax.f32 %v2116_v7, %v2244_v11  ;;  %v2180_v16 = vadd.f32 %v2052_v8, %v1892_v12 }
 0x278   : > { %2564 = vst.msk [vmem:[%s3646_s4 + $0x370] sm:$0xff] %vm2453_vm1, %v2435_v14  ;;  %v2245_v21 = vmul.f32 0.2, %v2117_v17  ;;  %v2059_v14 = vld [vmem:[%s4345_s2 + $0x3b0] sm:$0xff] }
 0x279   : > { %2501 = vst.msk [vmem:[%s3646_s4 + $0x178] sm:$0xff] %vm2453_vm1, %v2372_v15  ;;  %v2308_v20 = vmul.f32 0.2, %v2180_v16  ;;  %v1895_v22 = vpop.xlane.xlu0 %1894  ;;  %v1996_v15 = vld [vmem:[%s4345_s2 + $0x1b8] sm:$0xff] }
 0x27a   : > { %v1706_v23 = vpop.xlane.xlu1 %1705  ;;  %v2373_v25 = vmax.f32 %v2117_v17, %v2245_v21  ;;  %v2181_v26 = vadd.f32 %v2053_v18, %v1895_v22 }
 0x27b   : > { %v2436_v24 = vmax.f32 %v2180_v16, %v2308_v20  ;;  %v2118_v27 = vadd.f32 %v1990_v19, %v1706_v23 }
 0x27c   : > { %2502 = vst.msk [vmem:[%s3646_s4 + $0x180] sm:$0xff] %vm2453_vm1, %v2373_v25  ;;  %v2309_v30 = vmul.f32 0.2, %v2181_v26  ;;  %v1997_v25 = vld [vmem:[%s4345_s2 + $0x1c0] sm:$0xff] }
 0x27d   : > { %2565 = vst.msk [vmem:[%s3646_s4 + $0x378] sm:$0xff] %vm2453_vm1, %v2436_v24  ;;  %v2246_v31 = vmul.f32 0.2, %v2118_v27  ;;  %v1709_v33 = vpop.xlane.xlu0 %1708  ;;  %v2060_v24 = vld [vmem:[%s4345_s2 + $0x3b8] sm:$0xff] }
 0x27e   : > { %v1898_v32 = vpop.xlane.xlu1 %1897  ;;  %v2437_v34 = vmax.f32 %v2181_v26, %v2309_v30  ;;  %v2119_v37 = vadd.f32 %v1991_v29, %v1709_v33 }
 0x27f   : > { %v2374_v35 = vmax.f32 %v2118_v27, %v2246_v31  ;;  %v2182_v36 = vadd.f32 %v2054_v28, %v1898_v32 }
 0x280   : > { %2566 = vst.msk [vmem:[%s3646_s4 + $0x380] sm:$0xff] %vm2453_vm1, %v2437_v34  ;;  %v2247_v41 = vmul.f32 0.2, %v2119_v37  ;;  %v2061_v34 = vld [vmem:[%s4345_s2 + $0x3c0] sm:$0xff] }
 0x281   : > { %2503 = vst.msk [vmem:[%s3646_s4 + $0x188] sm:$0xff] %vm2453_vm1, %v2374_v35  ;;  %v2310_v40 = vmul.f32 0.2, %v2182_v36  ;;  %v1901_v42 = vpop.xlane.xlu0 %1900  ;;  %v1998_v35 = vld [vmem:[%s4345_s2 + $0x1c8] sm:$0xff] }
 0x282   : > { %v1712_v43 = vpop.xlane.xlu1 %1711  ;;  %v2375_v45 = vmax.f32 %v2119_v37, %v2247_v41  ;;  %v2183_v46 = vadd.f32 %v2055_v38, %v1901_v42 }
 0x283   : > { %v2438_v44 = vmax.f32 %v2182_v36, %v2310_v40  ;;  %v2120_v47 = vadd.f32 %v1992_v39, %v1712_v43 }
 0x284   : > { %2504 = vst.msk [vmem:[%s3646_s4 + $0x190] sm:$0xff] %vm2453_vm1, %v2375_v45  ;;  %v2311_v50 = vmul.f32 0.2, %v2183_v46  ;;  %v1999_v45 = vld [vmem:[%s4345_s2 + $0x1d0] sm:$0xff] }
 0x285   : > { %2567 = vst.msk [vmem:[%s3646_s4 + $0x388] sm:$0xff] %vm2453_vm1, %v2438_v44  ;;  %v2248_v51 = vmul.f32 0.2, %v2120_v47  ;;  %v1715_v53 = vpop.xlane.xlu0 %1714  ;;  %v2062_v44 = vld [vmem:[%s4345_s2 + $0x3c8] sm:$0xff] }
 0x286   : > { %v1904_v52 = vpop.xlane.xlu1 %1903  ;;  %v2439_v54 = vmax.f32 %v2183_v46, %v2311_v50  ;;  %v2121_v57 = vadd.f32 %v1993_v49, %v1715_v53 }
 0x287   : > { %v2376_v55 = vmax.f32 %v2120_v47, %v2248_v51  ;;  %v2184_v56 = vadd.f32 %v2056_v48, %v1904_v52 }
 0x288   : > { %2568 = vst.msk [vmem:[%s3646_s4 + $0x390] sm:$0xff] %vm2453_vm1, %v2439_v54  ;;  %v2249_v61 = vmul.f32 0.2, %v2121_v57  ;;  %v2063_v54 = vld [vmem:[%s4345_s2 + $0x3d0] sm:$0xff] }
 0x289   : > { %2505 = vst.msk [vmem:[%s3646_s4 + $0x198] sm:$0xff] %vm2453_vm1, %v2376_v55  ;;  %v2312_v60 = vmul.f32 0.2, %v2184_v56  ;;  %v1907_v62 = vpop.xlane.xlu0 %1906  ;;  %v2000_v55 = vld [vmem:[%s4345_s2 + $0x1d8] sm:$0xff] }
 0x28a   : > { %v1718_v63 = vpop.xlane.xlu1 %1717  ;;  %v2377_v1 = vmax.f32 %v2121_v57, %v2249_v61  ;;  %v2185_v2 = vadd.f32 %v2057_v58, %v1907_v62 }
 0x28b   : > { %v2440_v0 = vmax.f32 %v2184_v56, %v2312_v60  ;;  %v2122_v3 = vadd.f32 %v1994_v59, %v1718_v63 }
 0x28c   : > { %2506 = vst.msk [vmem:[%s3646_s4 + $0x1a0] sm:$0xff] %vm2453_vm1, %v2377_v1  ;;  %v2313_v6 = vmul.f32 0.2, %v2185_v2  ;;  %v2001_v1 = vld [vmem:[%s4345_s2 + $0x1e0] sm:$0xff] }
 0x28d   : > { %2569 = vst.msk [vmem:[%s3646_s4 + $0x398] sm:$0xff] %vm2453_vm1, %v2440_v0  ;;  %v2250_v7 = vmul.f32 0.2, %v2122_v3  ;;  %v1721_v9 = vpop.xlane.xlu0 %1720  ;;  %v2064_v0 = vld [vmem:[%s4345_s2 + $0x3d8] sm:$0xff] }
 0x28e   : > { %v1910_v8 = vpop.xlane.xlu1 %1909  ;;  %v2441_v10 = vmax.f32 %v2185_v2, %v2313_v6  ;;  %v2123_v13 = vadd.f32 %v1995_v5, %v1721_v9 }
 0x28f   : > { %v2378_v11 = vmax.f32 %v2122_v3, %v2250_v7  ;;  %v2186_v12 = vadd.f32 %v2058_v4, %v1910_v8 }
 0x290   : > { %2570 = vst.msk [vmem:[%s3646_s4 + $0x3a0] sm:$0xff] %vm2453_vm1, %v2441_v10  ;;  %v2251_v17 = vmul.f32 0.2, %v2123_v13  ;;  %v2065_v10 = vld [vmem:[%s4345_s2 + $0x3e0] sm:$0xff] }
 0x291   : > { %2507 = vst.msk [vmem:[%s3646_s4 + $0x1a8] sm:$0xff] %vm2453_vm1, %v2378_v11  ;;  %v2314_v16 = vmul.f32 0.2, %v2186_v12  ;;  %v1913_v18 = vpop.xlane.xlu0 %1912  ;;  %v2002_v11 = vld [vmem:[%s4345_s2 + $0x1e8] sm:$0xff] }
 0x292   : > { %v1724_v19 = vpop.xlane.xlu1 %1723  ;;  %v2379_v21 = vmax.f32 %v2123_v13, %v2251_v17  ;;  %v2187_v22 = vadd.f32 %v2059_v14, %v1913_v18 }
 0x293   : > { %v2442_v20 = vmax.f32 %v2186_v12, %v2314_v16  ;;  %v2124_v23 = vadd.f32 %v1996_v15, %v1724_v19 }
 0x294   : > { %2508 = vst.msk [vmem:[%s3646_s4 + $0x1b0] sm:$0xff] %vm2453_vm1, %v2379_v21  ;;  %v2315_v26 = vmul.f32 0.2, %v2187_v22  ;;  %v2003_v21 = vld [vmem:[%s4345_s2 + $0x1f0] sm:$0xff] }
 0x295   : > { %2571 = vst.msk [vmem:[%s3646_s4 + $0x3a8] sm:$0xff] %vm2453_vm1, %v2442_v20  ;;  %v2252_v27 = vmul.f32 0.2, %v2124_v23  ;;  %v1727_v29 = vpop.xlane.xlu0 %1726  ;;  %v2066_v20 = vld [vmem:[%s4345_s2 + $0x3e8] sm:$0xff] }
 0x296   : > { %v1916_v28 = vpop.xlane.xlu1 %1915  ;;  %v2443_v30 = vmax.f32 %v2187_v22, %v2315_v26  ;;  %v2125_v33 = vadd.f32 %v1997_v25, %v1727_v29 }
 0x297   : > { %v2380_v31 = vmax.f32 %v2124_v23, %v2252_v27  ;;  %v2188_v32 = vadd.f32 %v2060_v24, %v1916_v28 }
 0x298   : > { %2572 = vst.msk [vmem:[%s3646_s4 + $0x3b0] sm:$0xff] %vm2453_vm1, %v2443_v30  ;;  %v2253_v37 = vmul.f32 0.2, %v2125_v33  ;;  %v2067_v30 = vld [vmem:[%s4345_s2 + $0x3f0] sm:$0xff] }
 0x299   : > { %2509 = vst.msk [vmem:[%s3646_s4 + $0x1b8] sm:$0xff] %vm2453_vm1, %v2380_v31  ;;  %v2316_v36 = vmul.f32 0.2, %v2188_v32  ;;  %v1919_v38 = vpop.xlane.xlu0 %1918  ;;  %v2004_v31 = vld [vmem:[%s4345_s2 + $0x1f8] sm:$0xff] }
 0x29a   : > { %v1730_v39 = vpop.xlane.xlu1 %1729  ;;  %v2381_v41 = vmax.f32 %v2125_v33, %v2253_v37  ;;  %v2189_v42 = vadd.f32 %v2061_v34, %v1919_v38 }
 0x29b   : > { %v2444_v40 = vmax.f32 %v2188_v32, %v2316_v36  ;;  %v2126_v43 = vadd.f32 %v1998_v35, %v1730_v39 }
 0x29c   : > { %2510 = vst.msk [vmem:[%s3646_s4 + $0x1c0] sm:$0xff] %vm2453_vm1, %v2381_v41  ;;  %v2317_v46 = vmul.f32 0.2, %v2189_v42 }
 0x29d   : > { %2573 = vst.msk [vmem:[%s3646_s4 + $0x3b8] sm:$0xff] %vm2453_vm1, %v2444_v40  ;;  %v2254_v47 = vmul.f32 0.2, %v2126_v43  ;;  %v1733_v49 = vpop.xlane.xlu0 %1732  ;;  %v2068_v40 = vld [vmem:[%s4345_s2 + $0x3f8] sm:$0xff] }
 0x29e   : > { %v1922_v48 = vpop.xlane.xlu1 %1921  ;;  %v2445_v50 = vmax.f32 %v2189_v42, %v2317_v46  ;;  %v2127_v53 = vadd.f32 %v1999_v45, %v1733_v49 }
 0x29f   : > { %v2382_v51 = vmax.f32 %v2126_v43, %v2254_v47  ;;  %v2190_v52 = vadd.f32 %v2062_v44, %v1922_v48 }
 0x2a0   : > { %2574 = vst.msk [vmem:[%s3646_s4 + $0x3c0] sm:$0xff] %vm2453_vm1, %v2445_v50  ;;  %v2255_v57 = vmul.f32 0.2, %v2127_v53 }
 0x2a1   : > { %2511 = vst.msk [vmem:[%s3646_s4 + $0x1c8] sm:$0xff] %vm2453_vm1, %v2382_v51  ;;  %v2318_v56 = vmul.f32 0.2, %v2190_v52  ;;  %v1925_v58 = vpop.xlane.xlu0 %1924 }
 0x2a2   : > { %v1736_v59 = vpop.xlane.xlu1 %1735  ;;  %v2383_v61 = vmax.f32 %v2127_v53, %v2255_v57  ;;  %v2191_v62 = vadd.f32 %v2063_v54, %v1925_v58 }
 0x2a3   : > { %v2446_v60 = vmax.f32 %v2190_v52, %v2318_v56  ;;  %v2128_v63 = vadd.f32 %v2000_v55, %v1736_v59 }
 0x2a4   : > { %2512 = vst.msk [vmem:[%s3646_s4 + $0x1d0] sm:$0xff] %vm2453_vm1, %v2383_v61  ;;  %v2319_v2 = vmul.f32 0.2, %v2191_v62 }
 0x2a5   : > { %2575 = vst.msk [vmem:[%s3646_s4 + $0x3c8] sm:$0xff] %vm2453_vm1, %v2446_v60  ;;  %v2256_v3 = vmul.f32 0.2, %v2128_v63  ;;  %v1739_v5 = vpop.xlane.xlu0 %1738 }
 0x2a6   : > { %v1928_v4 = vpop.xlane.xlu1 %1927  ;;  %v2447_v6 = vmax.f32 %v2191_v62, %v2319_v2  ;;  %v2129_v9 = vadd.f32 %v2001_v1, %v1739_v5 }
 0x2a7   : > { %v2384_v7 = vmax.f32 %v2128_v63, %v2256_v3  ;;  %v2192_v8 = vadd.f32 %v2064_v0, %v1928_v4 }
 0x2a8   : > { %2576 = vst.msk [vmem:[%s3646_s4 + $0x3d0] sm:$0xff] %vm2453_vm1, %v2447_v6  ;;  %v2257_v13 = vmul.f32 0.2, %v2129_v9 }
 0x2a9   : > { %2513 = vst.msk [vmem:[%s3646_s4 + $0x1d8] sm:$0xff] %vm2453_vm1, %v2384_v7  ;;  %v2320_v12 = vmul.f32 0.2, %v2192_v8  ;;  %v1931_v14 = vpop.xlane.xlu0 %1930 }
 0x2aa   : > { %v1742_v15 = vpop.xlane.xlu1 %1741  ;;  %v2385_v17 = vmax.f32 %v2129_v9, %v2257_v13  ;;  %v2193_v18 = vadd.f32 %v2065_v10, %v1931_v14 }
 0x2ab   : > { %v2448_v16 = vmax.f32 %v2192_v8, %v2320_v12  ;;  %v2130_v19 = vadd.f32 %v2002_v11, %v1742_v15 }
 0x2ac   : > { %2514 = vst.msk [vmem:[%s3646_s4 + $0x1e0] sm:$0xff] %vm2453_vm1, %v2385_v17  ;;  %v2321_v22 = vmul.f32 0.2, %v2193_v18 }
 0x2ad   : > { %2577 = vst.msk [vmem:[%s3646_s4 + $0x3d8] sm:$0xff] %vm2453_vm1, %v2448_v16  ;;  %v2258_v23 = vmul.f32 0.2, %v2130_v19  ;;  %v1745_v25 = vpop.xlane.xlu0 %1744 }
 0x2ae   : > { %v1934_v24 = vpop.xlane.xlu1 %1933  ;;  %v2449_v26 = vmax.f32 %v2193_v18, %v2321_v22  ;;  %v2131_v29 = vadd.f32 %v2003_v21, %v1745_v25 }
 0x2af   : > { %v2386_v27 = vmax.f32 %v2130_v19, %v2258_v23  ;;  %v2194_v28 = vadd.f32 %v2066_v20, %v1934_v24 }
 0x2b0   : > { %2578 = vst.msk [vmem:[%s3646_s4 + $0x3e0] sm:$0xff] %vm2453_vm1, %v2449_v26  ;;  %v2259_v33 = vmul.f32 0.2, %v2131_v29 }
 0x2b1   : > { %2515 = vst.msk [vmem:[%s3646_s4 + $0x1e8] sm:$0xff] %vm2453_vm1, %v2386_v27  ;;  %v2322_v32 = vmul.f32 0.2, %v2194_v28  ;;  %v1937_v34 = vpop.xlane.xlu0 %1936 }
 0x2b2   : > { %v1748_v35 = vpop.xlane.xlu1 %1747  ;;  %v2387_v37 = vmax.f32 %v2131_v29, %v2259_v33  ;;  %v2195_v38 = vadd.f32 %v2067_v30, %v1937_v34 }
 0x2b3   : > { %v2450_v36 = vmax.f32 %v2194_v28, %v2322_v32  ;;  %v2132_v39 = vadd.f32 %v2004_v31, %v1748_v35 }
 0x2b4   : > { %2516 = vst.msk [vmem:[%s3646_s4 + $0x1f0] sm:$0xff] %vm2453_vm1, %v2387_v37  ;;  %v2323_v41 = vmul.f32 0.2, %v2195_v38 }
 0x2b5   : > { %2579 = vst.msk [vmem:[%s3646_s4 + $0x3e8] sm:$0xff] %vm2453_vm1, %v2450_v36  ;;  %v2260_v42 = vmul.f32 0.2, %v2132_v39 }
 0x2b6   : > { %v1940_v43 = vpop.xlane.xlu1 %1939  ;;  %v2451_v44 = vmax.f32 %v2195_v38, %v2323_v41 }
 0x2b7   : > { %v2388_v45 = vmax.f32 %v2132_v39, %v2260_v42  ;;  %v2196_v46 = vadd.f32 %v2068_v40, %v1940_v43 }
 0x2b8   : > { %2580 = vst.msk [vmem:[%s3646_s4 + $0x3f0] sm:$0xff] %vm2453_vm1, %v2451_v44 }
 0x2b9   : > { %2517 = vst.msk [vmem:[%s3646_s4 + $0x1f8] sm:$0xff] %vm2453_vm1, %v2388_v45  ;;  %v2324_v47 = vmul.f32 0.2, %v2196_v46 }
 0x2bb   : > { %v2452_v48 = vmax.f32 %v2196_v46, %v2324_v47 }
 0x2bd   : > { %2581 = vst.msk [vmem:[%s3646_s4 + $0x3f8] sm:$0xff] %vm2453_vm1, %v2452_v48 }
 0x2be PF: > { %s13_s14 = sadd.s32 1, %s3063_s14   ;;  %s4347_s12 = smov %s3059_s13 }
 0x2bf   : > { %p10_p5 = scmp.ge.s32.totalorder %s13_s14, 4   ;;  %s4348_s13 = smov %s4350_s15 }
 0x2c1   :  { %12 = sbr.rel (!%p10_p5) target bundleno = 2 (0x2), region = 62 }

</bundles_post_ra>
